<compile_context>
chip_gen: v7x
topology: tpu7x:2x2x1
jax: 0.10.0
libtpu: 0.0.40
codegen_flags: <defaults>
</compile_context>

<pallas_src>
import jax
import jax.numpy as jnp
from jax.experimental import pallas as pl
from jax.experimental.pallas import tpu as pltpu

# ----- synthetic hyper-parameters (consistent with the PyTorch module) -----
INPUT_DIM = 4
HIDDEN_DIM = 16
NUM_LAYERS = 1
SERVER_NUM = 4               # residual branches -> requires H == 2*SERVER_NUM
REDUCE = 16
RES_RATE = 1.0
H_IMG = 2 * SERVER_NUM       # 8
W_IMG = 8
DATA_ROW_DIM = (8, 8)        # hidden*H*W == row0 * (hidden*row1)
SEQ_LEN = 4
BATCH = 2


def _const_spec(shape):
    """Full-array block whose index does not change over the grid (fetched once)."""
    zeros = (0,) * len(shape)
    return pl.BlockSpec(shape, lambda t: zeros)


# --------------------------- Pallas kernel ----------------------------------
def convlstm_step_kernel(xm_ref, xr_ref, wx_ref, bmain_ref, wres_ref, wh_ref,
                         wse1_ref, bse1_ref, wse2_ref, bse2_ref,
                         wf1r_ref, sel_ref, bf1_ref,
                         out_ref, hpad_ref, c_ref):
    """One fully-fused ConvLSTM timestep (grid axis = time, sequential).

    xm_ref:  (1, B*H*W, 9*Cin)    full-image-padded im2col of x_t
    xr_ref:  (1, B*H*W, S*9*Cin)  strip-padded, block-diagonal im2col of x_t
    wx_ref:  (9*Cin, 4*Hid)       x-side of the main conv (tap-major)
    bmain_ref: (1, 4*Hid)         main conv bias
    wres_ref:(S*9*Cin, 4*Hid)     stacked residual convs (pre-scaled by
                                  res_rate * res_para[s])
    wh_ref:  (9, Hid, 4*Hid)      h-side 3x3 conv taps
    wse1/bse1/wse2/bse2:          SE MLP parameters
    wf1r_ref:(cpr, H*W, row1)     f1 weight split per channel-of-feat-row
    sel_ref: (cpr, row0, Hid)     0/1 channel-selection matrices (reorder via MXU)
    bf1_ref: (1, row1)            f1 bias
    out_ref: (1, B, row0, row1)   abs(f1(view(h_t))) for this timestep
    hpad_ref:(B, H+2, W+2, Hid)   zero-padded hidden state carried in VMEM
    c_ref:   (B, H*W, Hid)        cell state carried in VMEM
    """
    t = pl.program_id(0)
    B, Hp2, Wp2, Hid = hpad_ref.shape
    H, W = Hp2 - 2, Wp2 - 2
    FourH = wx_ref.shape[1]
    cpr, row0, _ = sel_ref.shape

    @pl.when(t == 0)
    def _init():
        hpad_ref[...] = jnp.zeros_like(hpad_ref)
        c_ref[...] = jnp.zeros_like(c_ref)

    # ---- x-side projections: one matmul each (the per-t im2col slabs are
    #      auto-pipelined by the BlockSpec, so this DMA overlaps step t-1) ----
    a = jnp.dot(xm_ref[0], wx_ref[...],
                preferred_element_type=jnp.float32) + bmain_ref[...]
    r = jnp.dot(xr_ref[0], wres_ref[...], preferred_element_type=jnp.float32)

    # ---- h-side 3x3 "same" conv: 9 shifted tap matmuls (K = Hid) -----------
    # (the padded borders of hpad_ref are zero and are never overwritten)
    conv_h = jnp.zeros((B * H * W, FourH), jnp.float32)
    k = 0
    for dy in range(3):
        for dx in range(3):
            patch = hpad_ref[:, dy:dy + H, dx:dx + W, :].reshape(B * H * W, Hid)
            conv_h = conv_h + jnp.dot(patch, wh_ref[k],
                                      preferred_element_type=jnp.float32)
            k += 1

    conv_comb = (a + conv_h).reshape(B, H * W, FourH)

    # ---- SE gate: global average pool + Linear/ReLU/Linear/Sigmoid ---------
    # (pool includes the conv bias, as in the reference; residual added after)
    gp = jnp.mean(conv_comb, axis=1)                                 # (B, 4*Hid)
    s1 = jnp.dot(gp, wse1_ref[...],
                 preferred_element_type=jnp.float32) + bse1_ref[...]
    s1 = jnp.maximum(s1, 0.0)
    s2 = jnp.dot(s1, wse2_ref[...],
                 preferred_element_type=jnp.float32) + bse2_ref[...]
    se = jax.nn.sigmoid(s2)

    cc = conv_comb * se[:, None, :] + r.reshape(B, H * W, FourH)

    # ---- LSTM gates & state update ------------------------------------------
    i_g = jax.nn.sigmoid(cc[..., 0:Hid])
    f_g = jax.nn.sigmoid(cc[..., Hid:2 * Hid])
    o_g = jax.nn.sigmoid(cc[..., 2 * Hid:3 * Hid])
    g_g = jnp.tanh(cc[..., 3 * Hid:4 * Hid])

    c_next = f_g * c_ref[...] + i_g * g_g
    h_next = o_g * jnp.tanh(c_next)                                  # (B, H*W, Hid)

    c_ref[...] = c_next
    hpad_ref[:, 1:1 + H, 1:1 + W, :] = h_next.reshape(B, H, W, Hid)

    # ---- fused f1 + abs ------------------------------------------------------
    # torch: view(n, l, row0, -1) of the NCHW h, then Linear(Hid*row1, row1), abs.
    # feat[b, r, cl*H*W + hw] == h[b, hw, cpr*r + cl]; the (row, channel)
    # selection is done with tiny 0/1 selection matmuls instead of relayouts.
    for b in range(B):
        y = bf1_ref[...]                                             # (1, row1)
        for cl in range(cpr):
            z = jnp.dot(h_next[b].T, wf1r_ref[cl],
                        preferred_element_type=jnp.float32)          # (Hid, row1)
            y = y + jnp.dot(sel_ref[cl], z,
                            preferred_element_type=jnp.float32)      # (row0, row1)
        out_ref[0, b] = jnp.abs(y)


# ----------------------------- JAX glue --------------------------------------
def _im2col9(xpad, out_h, out_w):
    """Tap-major 3x3 im2col of a zero-padded (..., H+2, W+2, C) tensor."""
    taps = [xpad[..., dy:dy + out_h, dx:dx + out_w, :]
            for dy in range(3) for dx in range(3)]
    return jnp.concatenate(taps, axis=-1)


def convlstm_forward(x, params):
    """x: (T, B, Cin, H, W) NCHW frames, batch_first=False like the reference."""
    T, B, Cin, H, W = x.shape
    Hid = params['wmain_h'].shape[1]
    FourH = 4 * Hid
    S = H // 2
    row0, row1 = DATA_ROW_DIM
    HW = H * W
    assert H * W == row0 * row1, "data_row_dim inconsistent with H*W"
    assert Hid % row0 == 0, "hidden_dim must be divisible by data_row_dim[0]"
    cpr = Hid // row0                          # channels per flattened feat row

    xn = jnp.transpose(x, (0, 1, 3, 4, 2)).astype(jnp.float32)   # (T,B,H,W,Cin)

    # im2col slabs are built once here (lane-dense 2-D operands for the MXU);
    # this is one-off XLA glue outside the recurrence.
    xpad = jnp.pad(xn, ((0, 0), (0, 0), (1, 1), (1, 1), (0, 0)))
    xcol_main = _im2col9(xpad, H, W).reshape(T, B * HW, 9 * Cin)

    # residual branches: each 2-row strip is padded independently and laid out
    # block-diagonally so all S branch convs become ONE matmul per step.
    strips = xn.reshape(T, B, S, 2, W, Cin)
    spad = jnp.pad(strips, ((0, 0), (0, 0), (0, 0), (1, 1), (1, 1), (0, 0)))
    rescol = _im2col9(spad, 2, W)                        # (T, B, S, 2, W, 9*Cin)
    eye = jnp.eye(S, dtype=jnp.float32)
    xcol_res = jnp.einsum('tbsrwk,sz->tbsrwzk', rescol, eye).reshape(
        T, B * HW, S * 9 * Cin)

    # f1 weight + channel-selection matrices for the in-kernel NCHW reorder.
    wf1r = params['wf1'].reshape(cpr, HW, row1)          # wf1[cl*HW + hw, j]
    r_idx = jnp.arange(row0).reshape(1, row0, 1)
    c_idx = jnp.arange(Hid).reshape(1, 1, Hid)
    cl_idx = jnp.arange(cpr).reshape(cpr, 1, 1)
    sel = (c_idx == cpr * r_idx + cl_idx).astype(jnp.float32)   # (cpr, row0, Hid)

    t_map3 = lambda t: (t, 0, 0)

    # ---- single fused launch: recurrence + SE + gates + f1 + abs ------------
    out = pl.pallas_call(
        convlstm_step_kernel,
        grid=(T,),
        out_shape=jax.ShapeDtypeStruct((T, B, row0, row1), jnp.float32),
        in_specs=[pl.BlockSpec((1, B * HW, 9 * Cin), t_map3),
                  pl.BlockSpec((1, B * HW, S * 9 * Cin), t_map3),
                  _const_spec(params['wmain_x'].shape),
                  _const_spec(params['bmain'].shape),
                  _const_spec(params['wres'].shape),
                  _const_spec(params['wmain_h'].shape),
                  _const_spec(params['wse1'].shape),
                  _const_spec(params['bse1'].shape),
                  _const_spec(params['wse2'].shape),
                  _const_spec(params['bse2'].shape),
                  _const_spec(wf1r.shape),
                  _const_spec(sel.shape),
                  _const_spec(params['bf1'].shape)],
        out_specs=pl.BlockSpec((1, B, row0, row1), lambda t: (t, 0, 0, 0)),
        scratch_shapes=[pltpu.VMEM((B, H + 2, W + 2, Hid), jnp.float32),
                        pltpu.VMEM((B, HW, Hid), jnp.float32)],
        compiler_params=pltpu.CompilerParams(
            dimension_semantics=("arbitrary",)),   # sequential: h/c carried in VMEM
    )(xcol_main, xcol_res, params['wmain_x'], params['bmain'], params['wres'],
      params['wmain_h'], params['wse1'], params['bse1'],
      params['wse2'], params['bse2'], wf1r, sel, params['bf1'])

    out = jnp.transpose(out, (1, 0, 2, 3))               # (B, T, row0, row1)

    # torch .squeeze(2).squeeze(0) semantics (only drop size-1 dims)
    if out.shape[2] == 1:
        out = jnp.squeeze(out, axis=2)
    if out.shape[0] == 1:
        out = jnp.squeeze(out, axis=0)
    return out


def init_params(key):
    Cin, Hid, S = INPUT_DIM, HIDDEN_DIM, SERVER_NUM
    FourH = 4 * Hid
    R = FourH // REDUCE
    row0, row1 = DATA_ROW_DIM
    ks = jax.random.split(key, 11)
    # main conv split into x-side / h-side (conv is linear: conv(cat[x,h]) =
    # conv_x(x) + conv_h(h) + bias); weights are tap-major im2col form.
    wmain_x = jax.random.normal(ks[0], (9 * Cin, FourH), jnp.float32) * 0.05
    wmain_h = jax.random.normal(ks[1], (9, Hid, FourH), jnp.float32) * 0.05
    bmain = jax.random.normal(ks[2], (1, FourH), jnp.float32) * 0.05
    # res_para is an uninitialized nn.Parameter in torch -> deterministic init here
    res_para = jax.random.normal(ks[3], (S,), jnp.float32) * 0.5
    wres_raw = jax.random.normal(ks[4], (S, 9 * Cin, FourH), jnp.float32) * 0.05
    # fold res_rate * res_para[s] into the (linear, bias-free) residual weights
    wres = (RES_RATE * res_para[:, None, None] * wres_raw).reshape(
        S * 9 * Cin, FourH)
    wse1 = jax.random.normal(ks[5], (FourH, R), jnp.float32) * 0.1
    bse1 = jax.random.normal(ks[6], (1, R), jnp.float32) * 0.1
    wse2 = jax.random.normal(ks[7], (R, FourH), jnp.float32) * 0.1
    bse2 = jax.random.normal(ks[8], (1, FourH), jnp.float32) * 0.1
    wf1 = jax.random.normal(ks[9], (Hid * row1, row1), jnp.float32) * 0.05
    bf1 = jax.random.normal(ks[10], (1, row1), jnp.float32) * 0.05
    return dict(wmain_x=wmain_x, wmain_h=wmain_h, bmain=bmain, wres=wres,
                wse1=wse1, bse1=bse1, wse2=wse2, bse2=bse2,
                wf1=wf1, bf1=bf1)


if __name__ == "__main__":
    key = jax.random.PRNGKey(0)
    kx, kp = jax.random.split(key)
    # (T, B, Cin, H, W) — batch_first=False; H must be 2*server_num for the module
    x = jax.random.normal(kx, (SEQ_LEN, BATCH, INPUT_DIM, H_IMG, W_IMG),
                          jnp.float32)
    params = init_params(kp)

    fwd = jax.jit(convlstm_forward)
    out = fwd(x, params)
    jax.block_until_ready(out)
    assert out.shape == (BATCH, SEQ_LEN, DATA_ROW_DIM[0], DATA_ROW_DIM[1]), out.shape
    assert bool(jnp.all(jnp.isfinite(out)))
    print("KERNEL_OK")
</pallas_src>

<mosaic_0001>
module attributes {stable_mosaic.version = 11 : i64} {
  func.func @convlstm_step_kernel(%arg0: i32, %arg1: memref<1x128x36xf32, #tpu.memory_space<vmem>>, %arg2: memref<1x128x144xf32, #tpu.memory_space<vmem>>, %arg3: memref<36x64xf32, #tpu.memory_space<vmem>>, %arg4: memref<1x64xf32, #tpu.memory_space<vmem>>, %arg5: memref<144x64xf32, #tpu.memory_space<vmem>>, %arg6: memref<9x16x64xf32, #tpu.memory_space<vmem>>, %arg7: memref<64x4xf32, #tpu.memory_space<vmem>>, %arg8: memref<1x4xf32, #tpu.memory_space<vmem>>, %arg9: memref<4x64xf32, #tpu.memory_space<vmem>>, %arg10: memref<1x64xf32, #tpu.memory_space<vmem>>, %arg11: memref<2x64x8xf32, #tpu.memory_space<vmem>>, %arg12: memref<2x8x16xf32, #tpu.memory_space<vmem>>, %arg13: memref<1x8xf32, #tpu.memory_space<vmem>>, %arg14: memref<1x2x8x8xf32, #tpu.memory_space<vmem>>, %arg15: memref<2x10x10x16xf32, #tpu.memory_space<vmem>>, %arg16: memref<2x64x16xf32, #tpu.memory_space<vmem>>) attributes {dimension_semantics = [#tpu.dimension_semantics<arbitrary>], iteration_bounds = array<i64: 4>, scalar_prefetch = 0 : i64, scratch_operands = 2 : i64, tpu.core_type = #tpu.core_type<tc>, window_params = [{transform_indices = @transform_0, window_bounds = array<i64: 1, 128, 36>}, {transform_indices = @transform_1, window_bounds = array<i64: 1, 128, 144>}, {pipeline_mode = #tpu.pipeline_mode<synchronous>, transform_indices = @transform_2, window_bounds = array<i64: 36, 64>}, {pipeline_mode = #tpu.pipeline_mode<synchronous>, transform_indices = @transform_3, window_bounds = array<i64: 1, 64>}, {pipeline_mode = #tpu.pipeline_mode<synchronous>, transform_indices = @transform_4, window_bounds = array<i64: 144, 64>}, {pipeline_mode = #tpu.pipeline_mode<synchronous>, transform_indices = @transform_5, window_bounds = array<i64: 9, 16, 64>}, {pipeline_mode = #tpu.pipeline_mode<synchronous>, transform_indices = @transform_6, window_bounds = array<i64: 64, 4>}, {pipeline_mode = #tpu.pipeline_mode<synchronous>, transform_indices = @transform_7, window_bounds = array<i64: 1, 4>}, {pipeline_mode = #tpu.pipeline_mode<synchronous>, transform_indices = @transform_8, window_bounds = array<i64: 4, 64>}, {pipeline_mode = #tpu.pipeline_mode<synchronous>, transform_indices = @transform_9, window_bounds = array<i64: 1, 64>}, {pipeline_mode = #tpu.pipeline_mode<synchronous>, transform_indices = @transform_10, window_bounds = array<i64: 2, 64, 8>}, {pipeline_mode = #tpu.pipeline_mode<synchronous>, transform_indices = @transform_11, window_bounds = array<i64: 2, 8, 16>}, {pipeline_mode = #tpu.pipeline_mode<synchronous>, transform_indices = @transform_12, window_bounds = array<i64: 1, 8>}, {transform_indices = @transform_13, window_bounds = array<i64: 1, 2, 8, 8>}]} {
    %c0_i32 = arith.constant 0 : i32
    %0 = arith.cmpi eq, %arg0, %c0_i32 : i32
    %1 = arith.extui %0 : i1 to i32
    %c0_i32_0 = arith.constant 0 : i32
    %2 = arith.cmpi ne, %1, %c0_i32_0 : i32
    scf.if %2 {
      %cst_149 = arith.constant 0.000000e+00 : f32
      %177 = vector.broadcast %cst_149 : f32 to vector<2x10x10x16xf32>
      %c0_150 = arith.constant 0 : index
      %c0_151 = arith.constant 0 : index
      %c0_152 = arith.constant 0 : index
      %c0_153 = arith.constant 0 : index
      %178 = vector.load %arg15[%c0_150, %c0_151, %c0_152, %c0_153] : memref<2x10x10x16xf32, #tpu.memory_space<vmem>>, vector<2x10x10x16xf32>
      tpu.vector_store %arg15[%c0_150, %c0_151, %c0_152, %c0_153], %177 {strides = array<i32>} : memref<2x10x10x16xf32, #tpu.memory_space<vmem>>, vector<2x10x10x16xf32>,
      %cst_154 = arith.constant 0.000000e+00 : f32
      %179 = vector.broadcast %cst_154 : f32 to vector<2x64x16xf32>
      %c0_155 = arith.constant 0 : index
      %c0_156 = arith.constant 0 : index
      %c0_157 = arith.constant 0 : index
      %180 = vector.load %arg16[%c0_155, %c0_156, %c0_157] : memref<2x64x16xf32, #tpu.memory_space<vmem>>, vector<2x64x16xf32>
      tpu.vector_store %arg16[%c0_155, %c0_156, %c0_157], %179 {strides = array<i32>} : memref<2x64x16xf32, #tpu.memory_space<vmem>>, vector<2x64x16xf32>,
    } else {
    }
    %c0 = arith.constant 0 : index
    %c0_1 = arith.constant 0 : index
    %c0_2 = arith.constant 0 : index
    %3 = vector.load %arg1[%c0, %c0_1, %c0_2] : memref<1x128x36xf32, #tpu.memory_space<vmem>>, vector<1x128x36xf32>
    %4 = vector.shape_cast %3 : vector<1x128x36xf32> to vector<128x36xf32>
    %c0_3 = arith.constant 0 : index
    %c0_4 = arith.constant 0 : index
    %5 = vector.load %arg3[%c0_3, %c0_4] : memref<36x64xf32, #tpu.memory_space<vmem>>, vector<36x64xf32>
    %cst = arith.constant dense<0.000000e+00> : vector<128x64xf32>
    %6 = tpu.matmul %4, %5, %cst {dimension_numbers = #tpu.dot_dimension_numbers<[1], [0], [0], [1], [0, 0, 1, 1], [], []>} : vector<128x36xf32>, vector<36x64xf32>, vector<128x64xf32> -> vector<128x64xf32>
    %c0_5 = arith.constant 0 : index
    %c0_6 = arith.constant 0 : index
    %7 = vector.load %arg4[%c0_5, %c0_6] : memref<1x64xf32, #tpu.memory_space<vmem>>, vector<1x64xf32>
    %8 = vector.broadcast %7 : vector<1x64xf32> to vector<128x64xf32>
    %9 = arith.addf %6, %8 : vector<128x64xf32>
    %c0_7 = arith.constant 0 : index
    %c0_8 = arith.constant 0 : index
    %c0_9 = arith.constant 0 : index
    %10 = vector.load %arg2[%c0_7, %c0_8, %c0_9] : memref<1x128x144xf32, #tpu.memory_space<vmem>>, vector<1x128x144xf32>
    %11 = vector.shape_cast %10 : vector<1x128x144xf32> to vector<128x144xf32>
    %c0_10 = arith.constant 0 : index
    %c0_11 = arith.constant 0 : index
    %12 = vector.load %arg5[%c0_10, %c0_11] : memref<144x64xf32, #tpu.memory_space<vmem>>, vector<144x64xf32>
    %cst_12 = arith.constant dense<0.000000e+00> : vector<128x64xf32>
    %13 = tpu.matmul %11, %12, %cst_12 {dimension_numbers = #tpu.dot_dimension_numbers<[1], [0], [0], [1], [0, 0, 1, 1], [], []>} : vector<128x144xf32>, vector<144x64xf32>, vector<128x64xf32> -> vector<128x64xf32>
    %cst_13 = arith.constant 0.000000e+00 : f32
    %14 = vector.broadcast %cst_13 : f32 to vector<128x64xf32>
    %c0_14 = arith.constant 0 : index
    %c0_15 = arith.constant 0 : index
    %c0_16 = arith.constant 0 : index
    %c0_17 = arith.constant 0 : index
    %15 = vector.load %arg15[%c0_14, %c0_15, %c0_16, %c0_17] : memref<2x10x10x16xf32, #tpu.memory_space<vmem>>, vector<2x8x8x16xf32>
    %16 = vector.shape_cast %15 : vector<2x8x8x16xf32> to vector<128x16xf32>
    %c0_18 = arith.constant 0 : index
    %c0_19 = arith.constant 0 : index
    %c0_20 = arith.constant 0 : index
    %17 = vector.load %arg6[%c0_18, %c0_19, %c0_20] : memref<9x16x64xf32, #tpu.memory_space<vmem>>, vector<1x16x64xf32>
    %18 = vector.shape_cast %17 : vector<1x16x64xf32> to vector<16x64xf32>
    %cst_21 = arith.constant dense<0.000000e+00> : vector<128x64xf32>
    %19 = tpu.matmul %16, %18, %cst_21 {dimension_numbers = #tpu.dot_dimension_numbers<[1], [0], [0], [1], [0, 0, 1, 1], [], []>} : vector<128x16xf32>, vector<16x64xf32>, vector<128x64xf32> -> vector<128x64xf32>
    %20 = arith.addf %14, %19 : vector<128x64xf32>
    %c0_22 = arith.constant 0 : index
    %c0_23 = arith.constant 0 : index
    %c1 = arith.constant 1 : index
    %c0_24 = arith.constant 0 : index
    %21 = vector.load %arg15[%c0_22, %c0_23, %c1, %c0_24] : memref<2x10x10x16xf32, #tpu.memory_space<vmem>>, vector<2x8x8x16xf32>
    %22 = vector.shape_cast %21 : vector<2x8x8x16xf32> to vector<128x16xf32>
    %c1_25 = arith.constant 1 : index
    %c0_26 = arith.constant 0 : index
    %c0_27 = arith.constant 0 : index
    %23 = vector.load %arg6[%c1_25, %c0_26, %c0_27] : memref<9x16x64xf32, #tpu.memory_space<vmem>>, vector<1x16x64xf32>
    %24 = vector.shape_cast %23 : vector<1x16x64xf32> to vector<16x64xf32>
    %cst_28 = arith.constant dense<0.000000e+00> : vector<128x64xf32>
    %25 = tpu.matmul %22, %24, %cst_28 {dimension_numbers = #tpu.dot_dimension_numbers<[1], [0], [0], [1], [0, 0, 1, 1], [], []>} : vector<128x16xf32>, vector<16x64xf32>, vector<128x64xf32> -> vector<128x64xf32>
    %26 = arith.addf %20, %25 : vector<128x64xf32>
    %c0_29 = arith.constant 0 : index
    %c0_30 = arith.constant 0 : index
    %c2 = arith.constant 2 : index
    %c0_31 = arith.constant 0 : index
    %27 = vector.load %arg15[%c0_29, %c0_30, %c2, %c0_31] : memref<2x10x10x16xf32, #tpu.memory_space<vmem>>, vector<2x8x8x16xf32>
    %28 = vector.shape_cast %27 : vector<2x8x8x16xf32> to vector<128x16xf32>
    %c2_32 = arith.constant 2 : index
    %c0_33 = arith.constant 0 : index
    %c0_34 = arith.constant 0 : index
    %29 = vector.load %arg6[%c2_32, %c0_33, %c0_34] : memref<9x16x64xf32, #tpu.memory_space<vmem>>, vector<1x16x64xf32>
    %30 = vector.shape_cast %29 : vector<1x16x64xf32> to vector<16x64xf32>
    %cst_35 = arith.constant dense<0.000000e+00> : vector<128x64xf32>
    %31 = tpu.matmul %28, %30, %cst_35 {dimension_numbers = #tpu.dot_dimension_numbers<[1], [0], [0], [1], [0, 0, 1, 1], [], []>} : vector<128x16xf32>, vector<16x64xf32>, vector<128x64xf32> -> vector<128x64xf32>
    %32 = arith.addf %26, %31 : vector<128x64xf32>
    %c0_36 = arith.constant 0 : index
    %c1_37 = arith.constant 1 : index
    %c0_38 = arith.constant 0 : index
    %c0_39 = arith.constant 0 : index
    %33 = vector.load %arg15[%c0_36, %c1_37, %c0_38, %c0_39] : memref<2x10x10x16xf32, #tpu.memory_space<vmem>>, vector<2x8x8x16xf32>
    %34 = vector.shape_cast %33 : vector<2x8x8x16xf32> to vector<128x16xf32>
    %c3 = arith.constant 3 : index
    %c0_40 = arith.constant 0 : index
    %c0_41 = arith.constant 0 : index
    %35 = vector.load %arg6[%c3, %c0_40, %c0_41] : memref<9x16x64xf32, #tpu.memory_space<vmem>>, vector<1x16x64xf32>
    %36 = vector.shape_cast %35 : vector<1x16x64xf32> to vector<16x64xf32>
    %cst_42 = arith.constant dense<0.000000e+00> : vector<128x64xf32>
    %37 = tpu.matmul %34, %36, %cst_42 {dimension_numbers = #tpu.dot_dimension_numbers<[1], [0], [0], [1], [0, 0, 1, 1], [], []>} : vector<128x16xf32>, vector<16x64xf32>, vector<128x64xf32> -> vector<128x64xf32>
    %38 = arith.addf %32, %37 : vector<128x64xf32>
    %c0_43 = arith.constant 0 : index
    %c1_44 = arith.constant 1 : index
    %c1_45 = arith.constant 1 : index
    %c0_46 = arith.constant 0 : index
    %39 = vector.load %arg15[%c0_43, %c1_44, %c1_45, %c0_46] : memref<2x10x10x16xf32, #tpu.memory_space<vmem>>, vector<2x8x8x16xf32>
    %40 = vector.shape_cast %39 : vector<2x8x8x16xf32> to vector<128x16xf32>
    %c4 = arith.constant 4 : index
    %c0_47 = arith.constant 0 : index
    %c0_48 = arith.constant 0 : index
    %41 = vector.load %arg6[%c4, %c0_47, %c0_48] : memref<9x16x64xf32, #tpu.memory_space<vmem>>, vector<1x16x64xf32>
    %42 = vector.shape_cast %41 : vector<1x16x64xf32> to vector<16x64xf32>
    %cst_49 = arith.constant dense<0.000000e+00> : vector<128x64xf32>
    %43 = tpu.matmul %40, %42, %cst_49 {dimension_numbers = #tpu.dot_dimension_numbers<[1], [0], [0], [1], [0, 0, 1, 1], [], []>} : vector<128x16xf32>, vector<16x64xf32>, vector<128x64xf32> -> vector<128x64xf32>
    %44 = arith.addf %38, %43 : vector<128x64xf32>
    %c0_50 = arith.constant 0 : index
    %c1_51 = arith.constant 1 : index
    %c2_52 = arith.constant 2 : index
    %c0_53 = arith.constant 0 : index
    %45 = vector.load %arg15[%c0_50, %c1_51, %c2_52, %c0_53] : memref<2x10x10x16xf32, #tpu.memory_space<vmem>>, vector<2x8x8x16xf32>
    %46 = vector.shape_cast %45 : vector<2x8x8x16xf32> to vector<128x16xf32>
    %c5 = arith.constant 5 : index
    %c0_54 = arith.constant 0 : index
    %c0_55 = arith.constant 0 : index
    %47 = vector.load %arg6[%c5, %c0_54, %c0_55] : memref<9x16x64xf32, #tpu.memory_space<vmem>>, vector<1x16x64xf32>
    %48 = vector.shape_cast %47 : vector<1x16x64xf32> to vector<16x64xf32>
    %cst_56 = arith.constant dense<0.000000e+00> : vector<128x64xf32>
    %49 = tpu.matmul %46, %48, %cst_56 {dimension_numbers = #tpu.dot_dimension_numbers<[1], [0], [0], [1], [0, 0, 1, 1], [], []>} : vector<128x16xf32>, vector<16x64xf32>, vector<128x64xf32> -> vector<128x64xf32>
    %50 = arith.addf %44, %49 : vector<128x64xf32>
    %c0_57 = arith.constant 0 : index
    %c2_58 = arith.constant 2 : index
    %c0_59 = arith.constant 0 : index
    %c0_60 = arith.constant 0 : index
    %51 = vector.load %arg15[%c0_57, %c2_58, %c0_59, %c0_60] : memref<2x10x10x16xf32, #tpu.memory_space<vmem>>, vector<2x8x8x16xf32>
    %52 = vector.shape_cast %51 : vector<2x8x8x16xf32> to vector<128x16xf32>
    %c6 = arith.constant 6 : index
    %c0_61 = arith.constant 0 : index
    %c0_62 = arith.constant 0 : index
    %53 = vector.load %arg6[%c6, %c0_61, %c0_62] : memref<9x16x64xf32, #tpu.memory_space<vmem>>, vector<1x16x64xf32>
    %54 = vector.shape_cast %53 : vector<1x16x64xf32> to vector<16x64xf32>
    %cst_63 = arith.constant dense<0.000000e+00> : vector<128x64xf32>
    %55 = tpu.matmul %52, %54, %cst_63 {dimension_numbers = #tpu.dot_dimension_numbers<[1], [0], [0], [1], [0, 0, 1, 1], [], []>} : vector<128x16xf32>, vector<16x64xf32>, vector<128x64xf32> -> vector<128x64xf32>
    %56 = arith.addf %50, %55 : vector<128x64xf32>
    %c0_64 = arith.constant 0 : index
    %c2_65 = arith.constant 2 : index
    %c1_66 = arith.constant 1 : index
    %c0_67 = arith.constant 0 : index
    %57 = vector.load %arg15[%c0_64, %c2_65, %c1_66, %c0_67] : memref<2x10x10x16xf32, #tpu.memory_space<vmem>>, vector<2x8x8x16xf32>
    %58 = vector.shape_cast %57 : vector<2x8x8x16xf32> to vector<128x16xf32>
    %c7 = arith.constant 7 : index
    %c0_68 = arith.constant 0 : index
    %c0_69 = arith.constant 0 : index
    %59 = vector.load %arg6[%c7, %c0_68, %c0_69] : memref<9x16x64xf32, #tpu.memory_space<vmem>>, vector<1x16x64xf32>
    %60 = vector.shape_cast %59 : vector<1x16x64xf32> to vector<16x64xf32>
    %cst_70 = arith.constant dense<0.000000e+00> : vector<128x64xf32>
    %61 = tpu.matmul %58, %60, %cst_70 {dimension_numbers = #tpu.dot_dimension_numbers<[1], [0], [0], [1], [0, 0, 1, 1], [], []>} : vector<128x16xf32>, vector<16x64xf32>, vector<128x64xf32> -> vector<128x64xf32>
    %62 = arith.addf %56, %61 : vector<128x64xf32>
    %c0_71 = arith.constant 0 : index
    %c2_72 = arith.constant 2 : index
    %c2_73 = arith.constant 2 : index
    %c0_74 = arith.constant 0 : index
    %63 = vector.load %arg15[%c0_71, %c2_72, %c2_73, %c0_74] : memref<2x10x10x16xf32, #tpu.memory_space<vmem>>, vector<2x8x8x16xf32>
    %64 = vector.shape_cast %63 : vector<2x8x8x16xf32> to vector<128x16xf32>
    %c8 = arith.constant 8 : index
    %c0_75 = arith.constant 0 : index
    %c0_76 = arith.constant 0 : index
    %65 = vector.load %arg6[%c8, %c0_75, %c0_76] : memref<9x16x64xf32, #tpu.memory_space<vmem>>, vector<1x16x64xf32>
    %66 = vector.shape_cast %65 : vector<1x16x64xf32> to vector<16x64xf32>
    %cst_77 = arith.constant dense<0.000000e+00> : vector<128x64xf32>
    %67 = tpu.matmul %64, %66, %cst_77 {dimension_numbers = #tpu.dot_dimension_numbers<[1], [0], [0], [1], [0, 0, 1, 1], [], []>} : vector<128x16xf32>, vector<16x64xf32>, vector<128x64xf32> -> vector<128x64xf32>
    %68 = arith.addf %62, %67 : vector<128x64xf32>
    %69 = arith.addf %9, %68 : vector<128x64xf32>
    %70 = vector.shape_cast %69 : vector<128x64xf32> to vector<2x64x64xf32>
    %cst_78 = arith.constant dense<0.000000e+00> : vector<2x64xf32>
    %71 = vector.multi_reduction <add>, %70, %cst_78 [1] : vector<2x64x64xf32> to vector<2x64xf32>
    %cst_79 = arith.constant 6.400000e+01 : f32
    %72 = vector.broadcast %cst_79 : f32 to vector<2x64xf32>
    %73 = arith.divf %71, %72 : vector<2x64xf32>
    %c0_80 = arith.constant 0 : index
    %c0_81 = arith.constant 0 : index
    %74 = vector.load %arg7[%c0_80, %c0_81] : memref<64x4xf32, #tpu.memory_space<vmem>>, vector<64x4xf32>
    %cst_82 = arith.constant dense<0.000000e+00> : vector<2x4xf32>
    %75 = tpu.matmul %73, %74, %cst_82 {dimension_numbers = #tpu.dot_dimension_numbers<[1], [0], [0], [1], [0, 0, 1, 1], [], []>} : vector<2x64xf32>, vector<64x4xf32>, vector<2x4xf32> -> vector<2x4xf32>
    %c0_83 = arith.constant 0 : index
    %c0_84 = arith.constant 0 : index
    %76 = vector.load %arg8[%c0_83, %c0_84] : memref<1x4xf32, #tpu.memory_space<vmem>>, vector<1x4xf32>
    %77 = vector.broadcast %76 : vector<1x4xf32> to vector<2x4xf32>
    %78 = arith.addf %75, %77 : vector<2x4xf32>
    %cst_85 = arith.constant 0.000000e+00 : f32
    %79 = vector.broadcast %cst_85 : f32 to vector<2x4xf32>
    %80 = arith.maximumf %78, %79 : vector<2x4xf32>
    %c0_86 = arith.constant 0 : index
    %c0_87 = arith.constant 0 : index
    %81 = vector.load %arg9[%c0_86, %c0_87] : memref<4x64xf32, #tpu.memory_space<vmem>>, vector<4x64xf32>
    %cst_88 = arith.constant dense<0.000000e+00> : vector<2x64xf32>
    %82 = tpu.matmul %80, %81, %cst_88 {dimension_numbers = #tpu.dot_dimension_numbers<[1], [0], [0], [1], [0, 0, 1, 1], [], []>} : vector<2x4xf32>, vector<4x64xf32>, vector<2x64xf32> -> vector<2x64xf32>
    %c0_89 = arith.constant 0 : index
    %c0_90 = arith.constant 0 : index
    %83 = vector.load %arg10[%c0_89, %c0_90] : memref<1x64xf32, #tpu.memory_space<vmem>>, vector<1x64xf32>
    %84 = vector.broadcast %83 : vector<1x64xf32> to vector<2x64xf32>
    %85 = arith.addf %82, %84 : vector<2x64xf32>
    %86 = arith.negf %85 : vector<2x64xf32>
    %87 = math.exp %86 : vector<2x64xf32>
    %cst_91 = arith.constant 1.000000e+00 : f32
    %88 = vector.broadcast %cst_91 : f32 to vector<2x64xf32>
    %89 = arith.addf %88, %87 : vector<2x64xf32>
    %90 = arith.divf %88, %89 : vector<2x64xf32>
    %91 = vector.shape_cast %90 : vector<2x64xf32> to vector<2x1x64xf32>
    %92 = vector.broadcast %91 : vector<2x1x64xf32> to vector<2x64x64xf32>
    %93 = arith.mulf %70, %92 : vector<2x64x64xf32>
    %94 = vector.shape_cast %13 : vector<128x64xf32> to vector<2x64x64xf32>
    %95 = arith.addf %93, %94 : vector<2x64x64xf32>
    %96 = vector.extract_strided_slice %95 {offsets = [0, 0, 0], sizes = [2, 64, 16], strides = [1, 1, 1]} : vector<2x64x64xf32> to vector<2x64x16xf32>
    %97 = arith.negf %96 : vector<2x64x16xf32>
    %98 = math.exp %97 : vector<2x64x16xf32>
    %cst_92 = arith.constant 1.000000e+00 : f32
    %99 = vector.broadcast %cst_92 : f32 to vector<2x64x16xf32>
    %100 = arith.addf %99, %98 : vector<2x64x16xf32>
    %101 = arith.divf %99, %100 : vector<2x64x16xf32>
    %102 = vector.extract_strided_slice %95 {offsets = [0, 0, 16], sizes = [2, 64, 16], strides = [1, 1, 1]} : vector<2x64x64xf32> to vector<2x64x16xf32>
    %103 = arith.negf %102 : vector<2x64x16xf32>
    %104 = math.exp %103 : vector<2x64x16xf32>
    %cst_93 = arith.constant 1.000000e+00 : f32
    %105 = vector.broadcast %cst_93 : f32 to vector<2x64x16xf32>
    %106 = arith.addf %105, %104 : vector<2x64x16xf32>
    %107 = arith.divf %105, %106 : vector<2x64x16xf32>
    %108 = vector.extract_strided_slice %95 {offsets = [0, 0, 32], sizes = [2, 64, 16], strides = [1, 1, 1]} : vector<2x64x64xf32> to vector<2x64x16xf32>
    %109 = arith.negf %108 : vector<2x64x16xf32>
    %110 = math.exp %109 : vector<2x64x16xf32>
    %cst_94 = arith.constant 1.000000e+00 : f32
    %111 = vector.broadcast %cst_94 : f32 to vector<2x64x16xf32>
    %112 = arith.addf %111, %110 : vector<2x64x16xf32>
    %113 = arith.divf %111, %112 : vector<2x64x16xf32>
    %114 = vector.extract_strided_slice %95 {offsets = [0, 0, 48], sizes = [2, 64, 16], strides = [1, 1, 1]} : vector<2x64x64xf32> to vector<2x64x16xf32>
    %115 = math.tanh %114 : vector<2x64x16xf32>
    %c0_95 = arith.constant 0 : index
    %c0_96 = arith.constant 0 : index
    %c0_97 = arith.constant 0 : index
    %116 = vector.load %arg16[%c0_95, %c0_96, %c0_97] : memref<2x64x16xf32, #tpu.memory_space<vmem>>, vector<2x64x16xf32>
    %117 = arith.mulf %107, %116 : vector<2x64x16xf32>
    %118 = arith.mulf %101, %115 : vector<2x64x16xf32>
    %119 = arith.addf %117, %118 : vector<2x64x16xf32>
    %120 = math.tanh %119 : vector<2x64x16xf32>
    %121 = arith.mulf %113, %120 : vector<2x64x16xf32>
    %c0_98 = arith.constant 0 : index
    %c0_99 = arith.constant 0 : index
    %c0_100 = arith.constant 0 : index
    %122 = vector.load %arg16[%c0_98, %c0_99, %c0_100] : memref<2x64x16xf32, #tpu.memory_space<vmem>>, vector<2x64x16xf32>
    tpu.vector_store %arg16[%c0_98, %c0_99, %c0_100], %119 {strides = array<i32>} : memref<2x64x16xf32, #tpu.memory_space<vmem>>, vector<2x64x16xf32>,
    %123 = vector.shape_cast %121 : vector<2x64x16xf32> to vector<2x8x8x16xf32>
    %c0_101 = arith.constant 0 : index
    %c1_102 = arith.constant 1 : index
    %c1_103 = arith.constant 1 : index
    %c0_104 = arith.constant 0 : index
    %124 = vector.load %arg15[%c0_101, %c1_102, %c1_103, %c0_104] : memref<2x10x10x16xf32, #tpu.memory_space<vmem>>, vector<2x8x8x16xf32>
    tpu.vector_store %arg15[%c0_101, %c1_102, %c1_103, %c0_104], %123 {strides = array<i32>} : memref<2x10x10x16xf32, #tpu.memory_space<vmem>>, vector<2x8x8x16xf32>,
    %c0_105 = arith.constant 0 : index
    %c0_106 = arith.constant 0 : index
    %125 = vector.load %arg13[%c0_105, %c0_106] : memref<1x8xf32, #tpu.memory_space<vmem>>, vector<1x8xf32>
    %126 = vector.extract_strided_slice %121 {offsets = [0, 0, 0], sizes = [1, 64, 16], strides = [1, 1, 1]} : vector<2x64x16xf32> to vector<1x64x16xf32>
    %127 = vector.shape_cast %126 : vector<1x64x16xf32> to vector<64x16xf32>
    %128 = tpu.transpose %127, [1, 0] : vector<64x16xf32> -> vector<16x64xf32>
    %c0_107 = arith.constant 0 : index
    %c0_108 = arith.constant 0 : index
    %c0_109 = arith.constant 0 : index
    %129 = vector.load %arg11[%c0_107, %c0_108, %c0_109] : memref<2x64x8xf32, #tpu.memory_space<vmem>>, vector<1x64x8xf32>
    %130 = vector.shape_cast %129 : vector<1x64x8xf32> to vector<64x8xf32>
    %cst_110 = arith.constant dense<0.000000e+00> : vector<16x8xf32>
    %131 = tpu.matmul %128, %130, %cst_110 {dimension_numbers = #tpu.dot_dimension_numbers<[1], [0], [0], [1], [0, 0, 1, 1], [], []>} : vector<16x64xf32>, vector<64x8xf32>, vector<16x8xf32> -> vector<16x8xf32>
    %c0_111 = arith.constant 0 : index
    %c0_112 = arith.constant 0 : index
    %c0_113 = arith.constant 0 : index
    %132 = vector.load %arg12[%c0_111, %c0_112, %c0_113] : memref<2x8x16xf32, #tpu.memory_space<vmem>>, vector<1x8x16xf32>
    %133 = vector.shape_cast %132 : vector<1x8x16xf32> to vector<8x16xf32>
    %cst_114 = arith.constant dense<0.000000e+00> : vector<8x8xf32>
    %134 = tpu.matmul %133, %131, %cst_114 {dimension_numbers = #tpu.dot_dimension_numbers<[1], [0], [0], [1], [0, 0, 1, 1], [], []>} : vector<8x16xf32>, vector<16x8xf32>, vector<8x8xf32> -> vector<8x8xf32>
    %135 = vector.broadcast %125 : vector<1x8xf32> to vector<8x8xf32>
    %136 = arith.addf %135, %134 : vector<8x8xf32>
    %137 = vector.extract_strided_slice %121 {offsets = [0, 0, 0], sizes = [1, 64, 16], strides = [1, 1, 1]} : vector<2x64x16xf32> to vector<1x64x16xf32>
    %138 = vector.shape_cast %137 : vector<1x64x16xf32> to vector<64x16xf32>
    %139 = tpu.transpose %138, [1, 0] : vector<64x16xf32> -> vector<16x64xf32>
    %c1_115 = arith.constant 1 : index
    %c0_116 = arith.constant 0 : index
    %c0_117 = arith.constant 0 : index
    %140 = vector.load %arg11[%c1_115, %c0_116, %c0_117] : memref<2x64x8xf32, #tpu.memory_space<vmem>>, vector<1x64x8xf32>
    %141 = vector.shape_cast %140 : vector<1x64x8xf32> to vector<64x8xf32>
    %cst_118 = arith.constant dense<0.000000e+00> : vector<16x8xf32>
    %142 = tpu.matmul %139, %141, %cst_118 {dimension_numbers = #tpu.dot_dimension_numbers<[1], [0], [0], [1], [0, 0, 1, 1], [], []>} : vector<16x64xf32>, vector<64x8xf32>, vector<16x8xf32> -> vector<16x8xf32>
    %c1_119 = arith.constant 1 : index
    %c0_120 = arith.constant 0 : index
    %c0_121 = arith.constant 0 : index
    %143 = vector.load %arg12[%c1_119, %c0_120, %c0_121] : memref<2x8x16xf32, #tpu.memory_space<vmem>>, vector<1x8x16xf32>
    %144 = vector.shape_cast %143 : vector<1x8x16xf32> to vector<8x16xf32>
    %cst_122 = arith.constant dense<0.000000e+00> : vector<8x8xf32>
    %145 = tpu.matmul %144, %142, %cst_122 {dimension_numbers = #tpu.dot_dimension_numbers<[1], [0], [0], [1], [0, 0, 1, 1], [], []>} : vector<8x16xf32>, vector<16x8xf32>, vector<8x8xf32> -> vector<8x8xf32>
    %146 = arith.addf %136, %145 : vector<8x8xf32>
    %147 = math.absf %146 : vector<8x8xf32>
    %c0_123 = arith.constant 0 : index
    %c0_124 = arith.constant 0 : index
    %c0_125 = arith.constant 0 : index
    %c0_126 = arith.constant 0 : index
    %148 = vector.load %arg14[%c0_123, %c0_124, %c0_125, %c0_126] : memref<1x2x8x8xf32, #tpu.memory_space<vmem>>, vector<1x1x8x8xf32>
    %149 = vector.shape_cast %148 : vector<1x1x8x8xf32> to vector<8x8xf32>
    %150 = vector.shape_cast %147 : vector<8x8xf32> to vector<1x1x8x8xf32>
    tpu.vector_store %arg14[%c0_123, %c0_124, %c0_125, %c0_126], %150 {strides = array<i32>} : memref<1x2x8x8xf32, #tpu.memory_space<vmem>>, vector<1x1x8x8xf32>,
    %c0_127 = arith.constant 0 : index
    %c0_128 = arith.constant 0 : index
    %151 = vector.load %arg13[%c0_127, %c0_128] : memref<1x8xf32, #tpu.memory_space<vmem>>, vector<1x8xf32>
    %152 = vector.extract_strided_slice %121 {offsets = [1, 0, 0], sizes = [1, 64, 16], strides = [1, 1, 1]} : vector<2x64x16xf32> to vector<1x64x16xf32>
    %153 = vector.shape_cast %152 : vector<1x64x16xf32> to vector<64x16xf32>
    %154 = tpu.transpose %153, [1, 0] : vector<64x16xf32> -> vector<16x64xf32>
    %c0_129 = arith.constant 0 : index
    %c0_130 = arith.constant 0 : index
    %c0_131 = arith.constant 0 : index
    %155 = vector.load %arg11[%c0_129, %c0_130, %c0_131] : memref<2x64x8xf32, #tpu.memory_space<vmem>>, vector<1x64x8xf32>
    %156 = vector.shape_cast %155 : vector<1x64x8xf32> to vector<64x8xf32>
    %cst_132 = arith.constant dense<0.000000e+00> : vector<16x8xf32>
    %157 = tpu.matmul %154, %156, %cst_132 {dimension_numbers = #tpu.dot_dimension_numbers<[1], [0], [0], [1], [0, 0, 1, 1], [], []>} : vector<16x64xf32>, vector<64x8xf32>, vector<16x8xf32> -> vector<16x8xf32>
    %c0_133 = arith.constant 0 : index
    %c0_134 = arith.constant 0 : index
    %c0_135 = arith.constant 0 : index
    %158 = vector.load %arg12[%c0_133, %c0_134, %c0_135] : memref<2x8x16xf32, #tpu.memory_space<vmem>>, vector<1x8x16xf32>
    %159 = vector.shape_cast %158 : vector<1x8x16xf32> to vector<8x16xf32>
    %cst_136 = arith.constant dense<0.000000e+00> : vector<8x8xf32>
    %160 = tpu.matmul %159, %157, %cst_136 {dimension_numbers = #tpu.dot_dimension_numbers<[1], [0], [0], [1], [0, 0, 1, 1], [], []>} : vector<8x16xf32>, vector<16x8xf32>, vector<8x8xf32> -> vector<8x8xf32>
    %161 = vector.broadcast %151 : vector<1x8xf32> to vector<8x8xf32>
    %162 = arith.addf %161, %160 : vector<8x8xf32>
    %163 = vector.extract_strided_slice %121 {offsets = [1, 0, 0], sizes = [1, 64, 16], strides = [1, 1, 1]} : vector<2x64x16xf32> to vector<1x64x16xf32>
    %164 = vector.shape_cast %163 : vector<1x64x16xf32> to vector<64x16xf32>
    %165 = tpu.transpose %164, [1, 0] : vector<64x16xf32> -> vector<16x64xf32>
    %c1_137 = arith.constant 1 : index
    %c0_138 = arith.constant 0 : index
    %c0_139 = arith.constant 0 : index
    %166 = vector.load %arg11[%c1_137, %c0_138, %c0_139] : memref<2x64x8xf32, #tpu.memory_space<vmem>>, vector<1x64x8xf32>
    %167 = vector.shape_cast %166 : vector<1x64x8xf32> to vector<64x8xf32>
    %cst_140 = arith.constant dense<0.000000e+00> : vector<16x8xf32>
    %168 = tpu.matmul %165, %167, %cst_140 {dimension_numbers = #tpu.dot_dimension_numbers<[1], [0], [0], [1], [0, 0, 1, 1], [], []>} : vector<16x64xf32>, vector<64x8xf32>, vector<16x8xf32> -> vector<16x8xf32>
    %c1_141 = arith.constant 1 : index
    %c0_142 = arith.constant 0 : index
    %c0_143 = arith.constant 0 : index
    %169 = vector.load %arg12[%c1_141, %c0_142, %c0_143] : memref<2x8x16xf32, #tpu.memory_space<vmem>>, vector<1x8x16xf32>
    %170 = vector.shape_cast %169 : vector<1x8x16xf32> to vector<8x16xf32>
    %cst_144 = arith.constant dense<0.000000e+00> : vector<8x8xf32>
    %171 = tpu.matmul %170, %168, %cst_144 {dimension_numbers = #tpu.dot_dimension_numbers<[1], [0], [0], [1], [0, 0, 1, 1], [], []>} : vector<8x16xf32>, vector<16x8xf32>, vector<8x8xf32> -> vector<8x8xf32>
    %172 = arith.addf %162, %171 : vector<8x8xf32>
    %173 = math.absf %172 : vector<8x8xf32>
    %c0_145 = arith.constant 0 : index
    %c1_146 = arith.constant 1 : index
    %c0_147 = arith.constant 0 : index
    %c0_148 = arith.constant 0 : index
    %174 = vector.load %arg14[%c0_145, %c1_146, %c0_147, %c0_148] : memref<1x2x8x8xf32, #tpu.memory_space<vmem>>, vector<1x1x8x8xf32>
    %175 = vector.shape_cast %174 : vector<1x1x8x8xf32> to vector<8x8xf32>
    %176 = vector.shape_cast %173 : vector<8x8xf32> to vector<1x1x8x8xf32>
    tpu.vector_store %arg14[%c0_145, %c1_146, %c0_147, %c0_148], %176 {strides = array<i32>} : memref<1x2x8x8xf32, #tpu.memory_space<vmem>>, vector<1x1x8x8xf32>,
    return
  }
  func.func @transform_0(%arg0: i32) -> (i32, i32, i32) {
    %c0_i32 = arith.constant 0 : i32
    %c0_i32_0 = arith.constant 0 : i32
    %c0_i32_1 = arith.constant 0 : i32
    return %arg0, %c0_i32, %c0_i32_0 : i32, i32, i32
  }
  func.func @transform_1(%arg0: i32) -> (i32, i32, i32) {
    %c0_i32 = arith.constant 0 : i32
    %c0_i32_0 = arith.constant 0 : i32
    %c0_i32_1 = arith.constant 0 : i32
    return %arg0, %c0_i32, %c0_i32_0 : i32, i32, i32
  }
  func.func @transform_2(%arg0: i32) -> (i32, i32) {
    %c0_i32 = arith.constant 0 : i32
    %c0_i32_0 = arith.constant 0 : i32
    %c0_i32_1 = arith.constant 0 : i32
    return %c0_i32, %c0_i32_0 : i32, i32
  }
  func.func @transform_3(%arg0: i32) -> (i32, i32) {
    %c0_i32 = arith.constant 0 : i32
    %c0_i32_0 = arith.constant 0 : i32
    %c0_i32_1 = arith.constant 0 : i32
    return %c0_i32, %c0_i32_0 : i32, i32
  }
  func.func @transform_4(%arg0: i32) -> (i32, i32) {
    %c0_i32 = arith.constant 0 : i32
    %c0_i32_0 = arith.constant 0 : i32
    %c0_i32_1 = arith.constant 0 : i32
    return %c0_i32, %c0_i32_0 : i32, i32
  }
  func.func @transform_5(%arg0: i32) -> (i32, i32, i32) {
    %c0_i32 = arith.constant 0 : i32
    %c0_i32_0 = arith.constant 0 : i32
    %c0_i32_1 = arith.constant 0 : i32
    %c0_i32_2 = arith.constant 0 : i32
    return %c0_i32, %c0_i32_0, %c0_i32_1 : i32, i32, i32
  }
  func.func @transform_6(%arg0: i32) -> (i32, i32) {
    %c0_i32 = arith.constant 0 : i32
    %c0_i32_0 = arith.constant 0 : i32
    %c0_i32_1 = arith.constant 0 : i32
    return %c0_i32, %c0_i32_0 : i32, i32
  }
  func.func @transform_7(%arg0: i32) -> (i32, i32) {
    %c0_i32 = arith.constant 0 : i32
    %c0_i32_0 = arith.constant 0 : i32
    %c0_i32_1 = arith.constant 0 : i32
    return %c0_i32, %c0_i32_0 : i32, i32
  }
  func.func @transform_8(%arg0: i32) -> (i32, i32) {
    %c0_i32 = arith.constant 0 : i32
    %c0_i32_0 = arith.constant 0 : i32
    %c0_i32_1 = arith.constant 0 : i32
    return %c0_i32, %c0_i32_0 : i32, i32
  }
  func.func @transform_9(%arg0: i32) -> (i32, i32) {
    %c0_i32 = arith.constant 0 : i32
    %c0_i32_0 = arith.constant 0 : i32
    %c0_i32_1 = arith.constant 0 : i32
    return %c0_i32, %c0_i32_0 : i32, i32
  }
  func.func @transform_10(%arg0: i32) -> (i32, i32, i32) {
    %c0_i32 = arith.constant 0 : i32
    %c0_i32_0 = arith.constant 0 : i32
    %c0_i32_1 = arith.constant 0 : i32
    %c0_i32_2 = arith.constant 0 : i32
    return %c0_i32, %c0_i32_0, %c0_i32_1 : i32, i32, i32
  }
  func.func @transform_11(%arg0: i32) -> (i32, i32, i32) {
    %c0_i32 = arith.constant 0 : i32
    %c0_i32_0 = arith.constant 0 : i32
    %c0_i32_1 = arith.constant 0 : i32
    %c0_i32_2 = arith.constant 0 : i32
    return %c0_i32, %c0_i32_0, %c0_i32_1 : i32, i32, i32
  }
  func.func @transform_12(%arg0: i32) -> (i32, i32) {
    %c0_i32 = arith.constant 0 : i32
    %c0_i32_0 = arith.constant 0 : i32
    %c0_i32_1 = arith.constant 0 : i32
    return %c0_i32, %c0_i32_0 : i32, i32
  }
  func.func @transform_13(%arg0: i32) -> (i32, i32, i32, i32) {
    %c0_i32 = arith.constant 0 : i32
    %c0_i32_0 = arith.constant 0 : i32
    %c0_i32_1 = arith.constant 0 : i32
    %c0_i32_2 = arith.constant 0 : i32
    return %arg0, %c0_i32, %c0_i32_0, %c0_i32_1 : i32, i32, i32, i32
  }
}

</mosaic_0001>

<bundles_post_ra>
// kernel: convlstm_forward.1
= control target key start
LH: loop header
LB: loop body
LE: loop exit
PB: predicated region body
PF: predicated region fallthrough
CT: control target
= control target key end

     0   :  { %s6233_s25 = smov 0   ;;  %s7595_s0 = inlined_call_operand.vmem [shape: f32[4,128,36], index: 0, kind: input, shape index: {}]   ;;  %s7596_s1 = inlined_call_operand.vmem [shape: f32[4,128,144], index: 1, kind: input, shape index: {}]   ;;  %s7597_s2 = inlined_call_operand.vmem [shape: f32[36,64], index: 2, kind: input, shape index: {}]   ;;  %s7598_s3 = inlined_call_operand.vmem [shape: f32[1,64], index: 3, kind: input, shape index: {}]   ;;  %s7599_s4 = inlined_call_operand.vmem [shape: f32[144,64], index: 4, kind: input, shape index: {}]   ;;  %s7600_s5 = inlined_call_operand.vmem [shape: f32[9,16,64], index: 5, kind: input, shape index: {}]   ;;  %s7601_s6 = inlined_call_operand.vmem [shape: f32[64,4], index: 6, kind: input, shape index: {}]   ;;  %s7602_s7 = inlined_call_operand.vmem [shape: f32[1,4], index: 7, kind: input, shape index: {}]   ;;  %s7603_s8 = inlined_call_operand.vmem [shape: f32[4,64], index: 8, kind: input, shape index: {}]   ;;  %s7604_s9 = inlined_call_operand.vmem [shape: f32[1,64], index: 9, kind: input, shape index: {}]   ;;  %s7605_s10 = inlined_call_operand.vmem [shape: f32[2,64,8], index: 10, kind: input, shape index: {}]   ;;  %s7606_s11 = inlined_call_operand.vmem [shape: f32[2,8,16], index: 11, kind: input, shape index: {}]   ;;  %s7607_s12 = inlined_call_operand.vmem [shape: f32[1,8], index: 12, kind: input, shape index: {}]   ;;  %s7608_s13 = inlined_call_operand.vmem [shape: f32[4,2,8,8], index: 13, kind: output, shape index: {}]  }
   0x1 LB: > { %s4745_s26 = sadd.s32 4294967295, %s6152_s25   ;;  %p4749_p0 = scmp.ge.s32.totalorder %s6152_s25, 1  ;;  %s6152_s25 = sphi %s6233_s25, %s23_s25  }
   0x2   : > { %p397_p1 = scmp.lt.s32.totalorder %s6152_s25, 5 }
   0x4   : > { %p398_p2 = pnand %p4749_p0, %p397_p1 }
   0x5   : > { %p446_p3 = scmp.lt.s32.totalorder (!%p398_p2), %s4745_s26, 3  ;;  %p4756_p4 = scmp.ne.s32.totalorder (!%p398_p2), %s4745_s26, 0 }
   0x6   : > { %401 = sbr.rel (%p398_p2) target bundleno = 2685 (0xa7d), region = 72 }
   0xd   : > { %s447_s27 = scalar_select %p446_p3, %s4745_s26, 3 }
   0xe   : > { %464 = sbr.rel (%p4756_p4) target bundleno = 43 (0x2b), region = 76  ;;  %vm465_vm0 = vcmask (!%p4756_p4), 130048   ;;  %vm467_vm1 = vcmask (!%p4756_p4), 123904   ;;  %v6154_v0 = vmov (!%p4756_p4), 0.0  }
   0xf   : > { %s5008_s28 = sshll.u32 %s447_s27, 7  ;;  %s5009_s29 = sshll.u32 %s447_s27, 8  ;;  %466 = vst.msk [vmem:[#allocation2] sm:$0xff] (!%p4756_p4), %vm465_vm0, %v6154_v0  ;;  %469 = vst.msk [vmem:[#allocation2 + $0x10] sm:$0xff] (!%p4756_p4), %vm465_vm0, %v6154_v0 }
  0x10   : > { %s6244_s15 = scalar_lea.vmem %s7595_s0, %s5008_s28  ;;  %s6249_s18 = scalar_lea.vmem %s7596_s1, %s5009_s29  ;;  %471 = vst.msk [vmem:[#allocation2 + $0x20] sm:$0xff] (!%p4756_p4), %vm465_vm0, %v6154_v0  ;;  %473 = vst.msk [vmem:[#allocation2 + $0x30] sm:$0xff] (!%p4756_p4), %vm465_vm0, %v6154_v0 }
  0x11   : > { %s5010_s19 = sshll.u32 %s447_s27, 4  ;;  %475 = vst.msk [vmem:[#allocation2 + $0x40] sm:$0xff] (!%p4756_p4), %vm465_vm0, %v6154_v0  ;;  %477 = vst.msk [vmem:[#allocation2 + $0x50] sm:$0xff] (!%p4756_p4), %vm465_vm0, %v6154_v0 }
  0x12   : > { %s6254_s22 = scalar_lea.vmem %s7608_s13, %s5010_s19  ;;  %479 = vst.msk [vmem:[#allocation2 + $0x60] sm:$0xff] (!%p4756_p4), %vm465_vm0, %v6154_v0  ;;  %481 = vst.msk [vmem:[#allocation2 + $0x70] sm:$0xff] (!%p4756_p4), %vm465_vm0, %v6154_v0 }
  0x13   : > { %483 = vst.msk [vmem:[#allocation2 + $0x80] sm:$0xff] (!%p4756_p4), %vm465_vm0, %v6154_v0  ;;  %485 = vst.msk [vmem:[#allocation2 + $0x90] sm:$0xff] (!%p4756_p4), %vm465_vm0, %v6154_v0 }
  0x14   : > { %487 = vst.msk [vmem:[#allocation2 + $0xa0] sm:$0xff] (!%p4756_p4), %vm465_vm0, %v6154_v0  ;;  %489 = vst.msk [vmem:[#allocation2 + $0xb0] sm:$0xff] (!%p4756_p4), %vm465_vm0, %v6154_v0 }
  0x15   : > { %491 = vst.msk [vmem:[#allocation2 + $0xc0] sm:$0xff] %vm465_vm0, %v6154_v0  ;;  %493 = vst.msk [vmem:[#allocation2 + $0xd0] sm:$0xff] %vm465_vm0, %v6154_v0 }
  0x16   : > { %495 = vst.msk [vmem:[#allocation2 + $0xe0] sm:$0xff] %vm465_vm0, %v6154_v0  ;;  %497 = vst.msk [vmem:[#allocation2 + $0xf0] sm:$0xff] %vm465_vm0, %v6154_v0 }
  0x17   : > { %499 = vst.msk [vmem:[#allocation2 + $0x100] sm:$0xff] %vm465_vm0, %v6154_v0  ;;  %501 = vst.msk [vmem:[#allocation2 + $0x110] sm:$0xff] %vm465_vm0, %v6154_v0 }
  0x18   : > { %503 = vst.msk [vmem:[#allocation2 + $0x120] sm:$0xff] %vm465_vm0, %v6154_v0  ;;  %505 = vst.msk [vmem:[#allocation2 + $0x130] sm:$0xff] %vm465_vm0, %v6154_v0 }
  0x19   : > { %507 = vst.msk [vmem:[#allocation3] sm:$0xff] %vm465_vm0, %v6154_v0  ;;  %508 = vst.msk [vmem:[#allocation3 + $0x8] sm:$0xff] %vm465_vm0, %v6154_v0 }
  0x1a   : > { %509 = vst.msk [vmem:[#allocation3 + $0x10] sm:$0xff] %vm465_vm0, %v6154_v0  ;;  %510 = vst.msk [vmem:[#allocation3 + $0x18] sm:$0xff] %vm465_vm0, %v6154_v0 }
  0x1b   : > { %511 = vst.msk [vmem:[#allocation3 + $0x20] sm:$0xff] %vm465_vm0, %v6154_v0  ;;  %512 = vst.msk [vmem:[#allocation3 + $0x28] sm:$0xff] %vm465_vm0, %v6154_v0 }
  0x1c   : > { %513 = vst.msk [vmem:[#allocation3 + $0x30] sm:$0xff] %vm465_vm0, %v6154_v0  ;;  %514 = vst.msk [vmem:[#allocation3 + $0x38] sm:$0xff] %vm465_vm0, %v6154_v0 }
  0x1d   : > { %515 = vst.msk [vmem:[#allocation3 + $0x40] sm:$0xff] %vm465_vm0, %v6154_v0  ;;  %516 = vst.msk [vmem:[#allocation3 + $0x48] sm:$0xff] %vm465_vm0, %v6154_v0 }
  0x1e   : > { %517 = vst.msk [vmem:[#allocation3 + $0x50] sm:$0xff] %vm465_vm0, %v6154_v0  ;;  %518 = vst.msk [vmem:[#allocation3 + $0x58] sm:$0xff] %vm465_vm0, %v6154_v0 }
  0x1f   : > { %519 = vst.msk [vmem:[#allocation3 + $0x60] sm:$0xff] %vm465_vm0, %v6154_v0  ;;  %520 = vst.msk [vmem:[#allocation3 + $0x68] sm:$0xff] %vm465_vm0, %v6154_v0 }
  0x20   : > { %521 = vst.msk [vmem:[#allocation3 + $0x70] sm:$0xff] %vm465_vm0, %v6154_v0  ;;  %522 = vst.msk [vmem:[#allocation3 + $0x78] sm:$0xff] %vm465_vm0, %v6154_v0 }
  0x21   : > { %468 = vst.msk [vmem:[#allocation2 + $0x8] sm:$0x3] %vm467_vm1, %v6154_v0  ;;  %470 = vst.msk [vmem:[#allocation2 + $0x18] sm:$0x3] %vm467_vm1, %v6154_v0 }
  0x22   : > { %472 = vst.msk [vmem:[#allocation2 + $0x28] sm:$0x3] %vm467_vm1, %v6154_v0  ;;  %474 = vst.msk [vmem:[#allocation2 + $0x38] sm:$0x3] %vm467_vm1, %v6154_v0 }
  0x23   : > { %476 = vst.msk [vmem:[#allocation2 + $0x48] sm:$0x3] %vm467_vm1, %v6154_v0  ;;  %478 = vst.msk [vmem:[#allocation2 + $0x58] sm:$0x3] %vm467_vm1, %v6154_v0 }
  0x24   : > { %480 = vst.msk [vmem:[#allocation2 + $0x68] sm:$0x3] %vm467_vm1, %v6154_v0  ;;  %482 = vst.msk [vmem:[#allocation2 + $0x78] sm:$0x3] %vm467_vm1, %v6154_v0 }
  0x25   : > { %484 = vst.msk [vmem:[#allocation2 + $0x88] sm:$0x3] %vm467_vm1, %v6154_v0  ;;  %486 = vst.msk [vmem:[#allocation2 + $0x98] sm:$0x3] %vm467_vm1, %v6154_v0 }
  0x26   : > { %488 = vst.msk [vmem:[#allocation2 + $0xa8] sm:$0x3] %vm467_vm1, %v6154_v0  ;;  %490 = vst.msk [vmem:[#allocation2 + $0xb8] sm:$0x3] %vm467_vm1, %v6154_v0 }
  0x27   : > { %492 = vst.msk [vmem:[#allocation2 + $0xc8] sm:$0x3] %vm467_vm1, %v6154_v0  ;;  %494 = vst.msk [vmem:[#allocation2 + $0xd8] sm:$0x3] %vm467_vm1, %v6154_v0 }
  0x28   : > { %496 = vst.msk [vmem:[#allocation2 + $0xe8] sm:$0x3] %vm467_vm1, %v6154_v0  ;;  %498 = vst.msk [vmem:[#allocation2 + $0xf8] sm:$0x3] %vm467_vm1, %v6154_v0 }
  0x29   : > { %500 = vst.msk [vmem:[#allocation2 + $0x108] sm:$0x3] %vm467_vm1, %v6154_v0  ;;  %502 = vst.msk [vmem:[#allocation2 + $0x118] sm:$0x3] %vm467_vm1, %v6154_v0 }
  0x2a   : > { %504 = vst.msk [vmem:[#allocation2 + $0x128] sm:$0x3] %vm467_vm1, %v6154_v0  ;;  %506 = vst.msk [vmem:[#allocation2 + $0x138] sm:$0x3] %vm467_vm1, %v6154_v0 }
  0x2b PF: > { %v539_v1 = vld [vmem:[%s7597_s2] sm:$0xff]  ;;  %v540_v2 = vld [vmem:[%s7597_s2 + $0x8] sm:$0xff]  ;;  %vm799_vm2 = vcmask 130048   ;;  %v541_v7 = vld [vmem:[%s7597_s2 + $0x10] sm:$0xff]  ;;  %vm551_vm3 = vcmask 293888   ;;  %vm600_vm4 = vcmask 1043456  }
  0x2c   : > { %v1009_v3 = vld [vmem:[%s7600_s5] sm:$0xff]  ;;  %v5671_v4 = vpack.c.bf16 %v540_v2, %v539_v1  ;;  %v1010_v5 = vld [vmem:[%s7600_s5 + $0x8] sm:$0xff]  ;;  %v542_v9 = vld [vmem:[%s7597_s2 + $0x18] sm:$0xff]  ;;  %v6155_v28 = vmov 0.0|0.0   ;;  %vm6156_vm5 = vmmov 0   ;;  %vm3030_vm6 = vcmask 523264  }
  0x2d   : > { %v993_v6 = vld [vmem:[#allocation2] sm:$0xff]  ;;  %v6327_v8 = vpack.c.bf16 %v1010_v5, %v1009_v3  ;;  %v5675_v11 = vpack.c.bf16 %v542_v9, %v541_v7  ;;  %v4826_v12 = vld [vmem:[%s7600_s5 + $0x28] sm:$0xff]  ;;  %v6342_v15 = vld [vmem:[#allocation2 + $0x10] sm:$0xff]  ;;  %vm3093_vm7 = vcmask 1041409   ;;  %vm3176_vm8 = vcmask 31744   ;;  %s6159_s19 = smov 80  }
  0x2e   : > { %5323 = vmatprep.mubr.msk.f32.mxu0 %vm799_vm2, %v993_v6  ;;  %v4825_v10 = vld [vmem:[%s7600_s5 + $0x20] sm:$0xff]  ;;  %5672 = vmatprep.subr.bf16.mxu1 %v5671_v4  ;;  %v4843_v16 = vld [vmem:[%s7600_s5 + $0x30] sm:$0xff]  ;;  %v4844_v18 = vld [vmem:[%s7600_s5 + $0x38] sm:$0xff]  ;;  %s6160_s20 = smov 16   ;;  %vm4312_vm9 = vcmask 64512  }
  0x2f   : > { %v523_v13 = vld [vmem:[%s6244_s15] sm:$0xff]  ;;  %5711 = vmatprep.subr.bf16.mxu0 %v6327_v8  ;;  %5674 = vmatpush3.bf16.msra.mxu1 %v5671_v4  ;;  %v5714_v14 = vpack.c.bf16 %v4826_v12, %v4825_v10  ;;  %v782_v20 = vld [vmem:[%s7599_s4 + $0x8] sm:$0xff]  ;;  %v5718_v22 = vpack.c.bf16 %v4844_v18, %v4843_v16  ;;  %v783_v25 = vld [vmem:[%s7599_s4 + $0x10] sm:$0xff] }
  0x30   : > { %5713 = vmatpush3.bf16.msra.mxu0 %v6327_v8  ;;  %5676 = vmatprep.subr.bf16.mxu1 %v5675_v11  ;;  %v543_v17 = vld [vmem:[%s7597_s2 + $0x20] sm:$0xf]  ;;  %v524_v23 = vld [vmem:[%s6244_s15 + $0x8] sm:$0xff]  ;;  %v784_v26 = vld [vmem:[%s7599_s4 + $0x18] sm:$0xff] }
  0x31   : > { %5715 = vmatprep.subr.bf16.mxu0 %v5714_v14  ;;  %5267 = vmatprep.mubr.msk.f32.mxu1 %vm551_vm3, %v523_v13  ;;  %v781_v19 = vld [vmem:[%s7599_s4] sm:$0xff]  ;;  %v525_v27 = vld [vmem:[%s6244_s15 + $0x10] sm:$0xff]  ;;  %v5683_v30 = vpack.c.bf16 %v784_v26, %v783_v25  ;;  %v786_v33 = vld [vmem:[%s7599_s4 + $0x28] sm:$0xff] }
  0x32   : > { %v1416_v21 = vld [vmem:[#allocation2 + $0x2] sm:$0xff]  ;;  %v5680_v24 = vpack.c.bf16 %v782_v20, %v781_v19  ;;  %v6375_v29 = vld [vmem:[#allocation2 + $0x12] sm:$0xff] }
  0x33   : > { %5324 = vmatmul.mubr.msk.f32.vlgmr.msra.gmra.mrb[0].mxu0 %vm799_vm2, %v6342_v15  ;;  %5678 = vmatpush3.bf16.msra.mxu1 %v5675_v11  ;;  %v6377_v31 = vld [vmem:[#allocation2 + $0x22] sm:$0xff]  ;;  %v526_v34 = vld [vmem:[%s6244_s15 + $0x18] sm:$0xff]  ;;  %v787_v39 = vld [vmem:[%s7599_s4 + $0x30] sm:$0xff] }
  0x34   : > { %5717 = vmatpush3.bf16.msra.mxu0 %v5714_v14  ;;  %5265 = vmatprep.subr.msk.mxu1 %vm600_vm4, %v543_v17  ;;  %v785_v32 = vld [vmem:[%s7599_s4 + $0x20] sm:$0xff]  ;;  %v6392_v35 = vld [vmem:[#allocation2 + $0x32] sm:$0xff]  ;;  %v528_v42 = vld [vmem:[%s6244_s15 + $0x28] sm:$0xff] }
  0x35   : > { %5351 = vmatprep.mubr.msk.f32.mxu0 %vm799_vm2, %v1416_v21  ;;  %5719 = vmatprep.subr.bf16.mxu0 %v5718_v22  ;;  %v527_v36 = vld [vmem:[%s6244_s15 + $0x20] sm:$0xff]  ;;  %v5686_v37 = vpack.c.bf16 %v786_v33, %v785_v32  ;;  %v788_v40 = vld [vmem:[%s7599_s4 + $0x38] sm:$0xff]  ;;  %v529_v43 = vld [vmem:[%s6244_s15 + $0x30] sm:$0xff] }
  0x36   : > { %v6395_v38 = vld [vmem:[#allocation2 + $0x42] sm:$0xff]  ;;  %v6407_v41 = vld [vmem:[#allocation2 + $0x52] sm:$0xff]  ;;  %v5689_v46 = vpack.c.bf16 %v788_v40, %v787_v39 }
  0x37   : > { %5266 = vmatpush3.msk.msra.mxu1 %vm600_vm4, %v543_v17  ;;  %v4861_v44 = vld [vmem:[%s7600_s5 + $0x40] sm:$0xff]  ;;  %v4862_v45 = vld [vmem:[%s7600_s5 + $0x48] sm:$0xff]  ;;  %v530_v51 = vld [vmem:[%s6244_s15 + $0x38] sm:$0xff] }
  0x38   : > { %5679 = vmatprep.subr.bf16.mxu1 %v6155_v28  ;;  %5268 = vmatmul.mubr.msk.f32.vlgmr.msra.gmra.mrb[0].mxu1 %vm551_vm3, %v524_v23  ;;  %v6420_v47 = vld [vmem:[#allocation2 + $0x62] sm:$0xff]  ;;  %v6422_v48 = vpack.c.bf16 %v4862_v45, %v4861_v44  ;;  %v6438_v52 = vld [vmem:[#allocation2 + $0x72] sm:$0xff] }
  0x39   : > { %5681 = vmatpush1.bf16.msra.mxu1 %v5680_v24  ;;  %5270 = vmatprep.mubr.msk.f32.mxu1 %vm551_vm3, %v525_v27  ;;  %v789_v49 = vld [vmem:[%s7599_s4 + $0x40] sm:$0xff]  ;;  %v790_v50 = vld [vmem:[%s7599_s4 + $0x48] sm:$0xff]  ;;  %v791_v56 = vld [vmem:[%s7599_s4 + $0x50] sm:$0xff] }
  0x3a   : > { %5682 = vmatprep.subr.bf16.mxu1 %v6155_v28  ;;  %v531_v53 = vld [vmem:[%s6244_s15 + $0x40] sm:$0xff]  ;;  %v5692_v54 = vpack.c.bf16 %v790_v50, %v789_v49  ;;  %v792_v57 = vld [vmem:[%s7599_s4 + $0x58] sm:$0xff]  ;;  %v532_v58 = vld [vmem:[%s6244_s15 + $0x48] sm:$0xff] }
  0x3b   : > { %5352 = vmatmul.mubr.msk.f32.vlgmr.msra.gmra.mrb[0].mxu0 %vm799_vm2, %v6375_v29  ;;  %v1424_v55 = vld [vmem:[#allocation2 + $0xa2] sm:$0xff]  ;;  %v6455_v59 = vld [vmem:[#allocation2 + $0xb2] sm:$0xff]  ;;  %v5695_v61 = vpack.c.bf16 %v792_v57, %v791_v56 }
  0x3c   : > { %5721 = vmatpush3.bf16.msra.mxu0 %v5718_v22  ;;  %5354 = vmatprep.mubr.msk.f32.mxu0 %vm799_vm2, %v6377_v31  ;;  %v533_v60 = vld [vmem:[%s6244_s15 + $0x50] sm:$0xff]  ;;  %v6458_v62 = vld [vmem:[#allocation2 + $0xc2] sm:$0xff]  ;;  %v534_v1 = vld [vmem:[%s6244_s15 + $0x58] sm:$0xff] }
  0x3d   : > { %5684 = vmatpush1.bf16.msra.mxu1 %v5683_v30  ;;  %5723 = vmatprep.subr.bf16.mxu0 %v6422_v48  ;;  %v793_v63 = vld [vmem:[%s7599_s4 + $0x60] sm:$0xff]  ;;  %v794_v0 = vld [vmem:[%s7599_s4 + $0x68] sm:$0xff]  ;;  %v6474_v2 = vld [vmem:[#allocation2 + $0xd2] sm:$0xff] }
  0x3e   : > { %5271 = vmatmul.mubr.msk.f32.gmra.mrb[2].mxu1 %vm551_vm3, %v526_v34  ;;  %5685 = vmatprep.subr.bf16.mxu1 %v6155_v28  ;;  %v535_v3 = vld [vmem:[%s6244_s15 + $0x60] sm:$0xff]  ;;  %v5698_v4 = vpack.c.bf16 %v794_v0, %v793_v63  ;;  %v795_v6 = vld [vmem:[%s7599_s4 + $0x70] sm:$0xff]  ;;  %v796_v7 = vld [vmem:[%s7599_s4 + $0x78] sm:$0xff] }
  0x3f   : > { %5355 = vmatmul.mubr.msk.f32.gmra.mrb[2].mxu0 %vm799_vm2, %v6392_v35  ;;  %5273 = vmatprep.mubr.msk.f32.mxu1 %vm551_vm3, %v527_v36  ;;  %v6477_v5 = vld [vmem:[#allocation2 + $0xe2] sm:$0xff]  ;;  %v6493_v10 = vld [vmem:[#allocation2 + $0xf2] sm:$0xff]  ;;  %v5701_v12 = vpack.c.bf16 %v796_v7, %v795_v6 }
  0x40   : > { %5357 = vmatprep.mubr.msk.f32.mxu0 %vm799_vm2, %v6395_v38  ;;  %v536_v9 = vld [vmem:[%s6244_s15 + $0x68] sm:$0xff]  ;;  %v537_v11 = vld [vmem:[%s6244_s15 + $0x70] sm:$0xff]  ;;  %v797_v14 = vld [vmem:[%s7599_s4 + $0x80] sm:$0xff] }
  0x41   : > { %5687 = vmatpush1.bf16.msra.mxu1 %v5686_v37  ;;  %v6496_v13 = vld [vmem:[#allocation2 + $0x102] sm:$0xff]  ;;  %v538_v17 = vld [vmem:[%s6244_s15 + $0x78] sm:$0xff]  ;;  %v4791_v21 = vld [vmem:[%s7600_s5 + $0x10] sm:$0xff] }
  0x42   : > { %5274 = vmatmul.mubr.msk.f32.gmra.mrb[4].mxu1 %vm551_vm3, %v528_v42  ;;  %5688 = vmatprep.subr.bf16.mxu1 %v6155_v28  ;;  %v798_v16 = vld [vmem:[%s7599_s4 + $0x88] sm:$0xff]  ;;  %v6512_v18 = vld [vmem:[#allocation2 + $0x112] sm:$0xff]  ;;  %v6534_v26 = vld [vmem:[#allocation2 + $0x20] sm:$0xff] }
  0x43   : > { %5358 = vmatmul.mubr.msk.f32.gmra.mrb[4].mxu0 %vm799_vm2, %v6407_v41  ;;  %5276 = vmatprep.mubr.msk.f32.mxu1 %vm551_vm3, %v529_v43  ;;  %v750_v19 = vld [vmem:[%s6249_s18 + $0x8] sm:$0xff]  ;;  %v5704_v20 = vpack.c.bf16 %v798_v16, %v797_v14  ;;  %v4792_v22 = vld [vmem:[%s7600_s5 + $0x18] sm:$0xff]  ;;  %v4879_v23 = vld [vmem:[%s7600_s5 + $0x50] sm:$0xff] }
  0x44   : > { %5360 = vmatprep.mubr.msk.f32.mxu0 %vm799_vm2, %v6420_v47  ;;  %v4880_v24 = vld [vmem:[%s7600_s5 + $0x58] sm:$0xff]  ;;  %v5706_v25 = vpack.c.bf16 %v4792_v22, %v4791_v21  ;;  %v749_v27 = vld [vmem:[%s6249_s18] sm:$0xff]  ;;  %v6537_v30 = vld [vmem:[#allocation2 + $0x30] sm:$0xff] }
  0x45   : > { %5690 = vmatpush1.bf16.msra.mxu1 %v5689_v46  ;;  %v752_v32 = vld [vmem:[%s6249_s18 + $0x18] sm:$0xff]  ;;  %v6540_v33 = vpack.c.bf16 %v4880_v24, %v4879_v23  ;;  %v6545_v34 = vld [vmem:[#allocation2 + $0x40] sm:$0xff]  ;;  %v6551_v36 = vld [vmem:[#allocation2 + $0x50] sm:$0xff] }
  0x46   : > { %5277 = vmatmul.mubr.msk.f32.gmra.mrb[6].mxu1 %vm551_vm3, %v530_v51  ;;  %5691 = vmatprep.subr.bf16.mxu1 %v6155_v28  ;;  %v754_v37 = vld [vmem:[%s6249_s18 + $0x28] sm:$0xff]  ;;  %v6560_v39 = vld [vmem:[#allocation2 + $0x60] sm:$0xff]  ;;  %v6564_v42 = vld [vmem:[#allocation2 + $0x70] sm:$0xff] }
  0x47   : > { %5361 = vmatmul.mubr.msk.f32.gmra.mrb[6].mxu0 %vm799_vm2, %v6438_v52  ;;  %5279 = vmatprep.mubr.msk.f32.mxu1 %vm551_vm3, %v531_v53  ;;  %v753_v40 = vld [vmem:[%s6249_s18 + $0x20] sm:$0xff]  ;;  %v756_v43 = vld [vmem:[%s6249_s18 + $0x38] sm:$0xff]  ;;  %v755_v45 = vld [vmem:[%s6249_s18 + $0x30] sm:$0xff] }
  0x48   : > { %5363 = vmatprep.mubr.msk.f32.mxu0 %vm799_vm2, %v1424_v55  ;;  %v6571_v44 = vld [vmem:[#allocation2 + $0x80] sm:$0xff]  ;;  %v6575_v46 = vld [vmem:[#allocation2 + $0xb0] sm:$0xff]  ;;  %v760_v53 = vld [vmem:[%s6249_s18 + $0x58] sm:$0xff] }
  0x49   : > { %5693 = vmatpush1.bf16.msra.mxu1 %v5692_v54  ;;  %v6582_v49 = vld [vmem:[#allocation2 + $0xc0] sm:$0xff]  ;;  %v6586_v51 = vld [vmem:[#allocation2 + $0xd0] sm:$0xff]  ;;  %v762_v57 = vld [vmem:[%s6249_s18 + $0x68] sm:$0xff] }
  0x4a   : > { %5280 = vmatmul.mubr.msk.f32.gmra.mrb[8].mxu1 %vm551_vm3, %v532_v58  ;;  %5694 = vmatprep.subr.bf16.mxu1 %v6155_v28  ;;  %v757_v50 = vld [vmem:[%s6249_s18 + $0x40] sm:$0xff]  ;;  %v759_v55 = vld [vmem:[%s6249_s18 + $0x50] sm:$0xff]  ;;  %v764_v63 = vld [vmem:[%s6249_s18 + $0x78] sm:$0xff] }
  0x4b   : > { %5364 = vmatmul.mubr.msk.f32.gmra.mrb[8].mxu0 %vm799_vm2, %v6455_v59  ;;  %5282 = vmatprep.mubr.msk.f32.mxu1 %vm551_vm3, %v533_v60  ;;  %v6593_v54 = vld [vmem:[#allocation2 + $0xe0] sm:$0xff]  ;;  %v6597_v56 = vld [vmem:[#allocation2 + $0xf0] sm:$0xff]  ;;  %v4898_v7 = vld [vmem:[%s7600_s5 + $0x68] sm:$0xff] }
  0x4c   : > { %5366 = vmatprep.mubr.msk.f32.mxu0 %vm799_vm2, %v6458_v62  ;;  %v6604_v58 = vld [vmem:[#allocation2 + $0x100] sm:$0xff]  ;;  %v768_v14 = vld [vmem:[%s6249_s18 + $0x98] sm:$0xff]  ;;  %v770_v21 = vld [vmem:[%s6249_s18 + $0xa8] sm:$0xff] }
  0x4d   : > { %5696 = vmatpush1.bf16.msra.mxu1 %v5695_v61  ;;  %v761_v60 = vld [vmem:[%s6249_s18 + $0x60] sm:$0xff]  ;;  %v6608_v61 = vld [vmem:[#allocation2 + $0x110] sm:$0xff] }
  0x4e   : > { %5283 = vmatmul.mubr.msk.f32.gmra.mrb[10].mxu1 %vm551_vm3, %v534_v1  ;;  %5697 = vmatprep.subr.bf16.mxu1 %v6155_v28  ;;  %v6615_v0 = vld [vmem:[#allocation2 + $0x120] sm:$0xff]  ;;  %v763_v1 = vld [vmem:[%s6249_s18 + $0x70] sm:$0xff] }
  0x4f   : > { %5367 = vmatmul.mubr.msk.f32.gmra.mrb[10].mxu0 %vm799_vm2, %v6474_v2  ;;  %5285 = vmatprep.mubr.msk.f32.mxu1 %vm551_vm3, %v535_v3  ;;  %v6619_v3 = vld [vmem:[#allocation2 + $0x11] sm:$0xff]  ;;  %v4897_v6 = vld [vmem:[%s7600_s5 + $0x60] sm:$0xff] }
  0x50   : > { %5369 = vmatprep.mubr.msk.f32.mxu0 %vm799_vm2, %v6477_v5  ;;  %v6639_v16 = vpack.c.bf16 %v4898_v7, %v4897_v6  ;;  %v6658_v22 = vld [vmem:[#allocation2 + $0x61] sm:$0xff]  ;;  %v6662_v24 = vld [vmem:[#allocation2 + $0x71] sm:$0xff] }
  0x51   : > { %5699 = vmatpush1.bf16.msra.mxu1 %v5698_v4  ;;  %v766_v4 = vld [vmem:[%s6249_s18 + $0x88] sm:$0xff]  ;;  %v769_v23 = vld [vmem:[%s6249_s18 + $0xa0] sm:$0xff]  ;;  %v779_v6 = vld [vmem:[%s6249_s18 + $0xf0] sm:$0xff] }
  0x52   : > { %5286 = vmatmul.mubr.msk.f32.gmra.mrb[12].mxu1 %vm551_vm3, %v536_v9  ;;  %5700 = vmatprep.subr.bf16.mxu1 %v6155_v28  ;;  %v6632_v9 = vld [vmem:[#allocation2 + $0x21] sm:$0xff] }
  0x53   : > { %5370 = vmatmul.mubr.msk.f32.gmra.mrb[12].mxu0 %vm799_vm2, %v6493_v10  ;;  %5288 = vmatprep.mubr.msk.f32.mxu1 %vm551_vm3, %v537_v11  ;;  %v765_v11 = vld [vmem:[%s6249_s18 + $0x80] sm:$0xff] }
  0x54   : > { %5372 = vmatprep.mubr.msk.f32.mxu0 %vm799_vm2, %v6496_v13  ;;  %v1011_v7 = vld [vmem:[#allocation2 + $0x1] sm:$0xff] }
  0x55   : > { %5702 = vmatpush1.bf16.msra.mxu1 %v5701_v12  ;;  %v6636_v12 = vld [vmem:[#allocation2 + $0x31] sm:$0xff] }
  0x56   : > { %5289 = vmatmul.mubr.msk.f32.gmra.mrb[14].mxu1 %vm551_vm3, %v538_v17  ;;  %5703 = vmatprep.subr.bf16.mxu1 %v6155_v28  ;;  %v6644_v17 = vld [vmem:[#allocation2 + $0x41] sm:$0xff] }
  0x57   : > { %5373 = vmatmul.mubr.msk.f32.gmra.mrb[14].mxu0 %vm799_vm2, %v6512_v18  ;;  %4775 = vmatprep.mubr.msk.f32.mxu1 %vm799_vm2, %v750_v19  ;;  %v767_v19 = vld [vmem:[%s6249_s18 + $0x90] sm:$0xff] }
  0x58   : > { %5379 = vmatprep.mubr.msk.f32.mxu0 %vm799_vm2, %v6342_v15  ;;  %v751_v15 = vld [vmem:[%s6249_s18 + $0x10] sm:$0xff] }
  0x59   : > { %5705 = vmatpush1.bf16.msra.mxu1 %v5704_v20  ;;  %v6650_v20 = vld [vmem:[#allocation2 + $0x51] sm:$0xff] }
  0x5a   : > { %5707 = vmatprep.subr.bf16.mxu1 %v5706_v25 }
  0x5b   : > { %5380 = vmatmul.mubr.msk.f32.vlgmr.msra.gmra.mrb[0].mxu0 %vm799_vm2, %v6534_v26 }
  0x5c   : > { %5725 = vmatpush3.bf16.msra.mxu0 %v6422_v48  ;;  %913 = vmatmul.mubr.f32.vlgmr.msra.gmra.mrb[16].mxu1 %v749_v27  ;;  %v758_v48 = vld [vmem:[%s6249_s18 + $0x48] sm:$0xff] }
  0x5d   : > { %5382 = vmatprep.mubr.msk.f32.mxu0 %vm799_vm2, %v6537_v30  ;;  %4776 = vmatprep.mubr.msk.f32.mxu1 %vm799_vm2, %v752_v32  ;;  %v6669_v27 = vld [vmem:[#allocation2 + $0x81] sm:$0xff]  ;;  %v771_v32 = vld [vmem:[%s6249_s18 + $0xb0] sm:$0xff] }
  0x5e   : > { %5727 = vmatprep.subr.bf16.mxu0 %v6540_v33  ;;  %5709 = vmatpush3.bf16.msra.mxu1 %v5706_v25  ;;  %v772_v25 = vld [vmem:[%s6249_s18 + $0xb8] sm:$0xff] }
  0x5f   : > { %5383 = vmatmul.mubr.msk.f32.gmra.mrb[2].mxu0 %vm799_vm2, %v6545_v34  ;;  %5830 = vmatprep.subr.bf16.mxu1 %v6327_v8 }
  0x60   : > { %918 = vmatmul.mubr.f32.gmra.mrb[18].mxu1 %v751_v15  ;;  %5385 = vmatprep.mubr.msk.f32.mxu0 %vm799_vm2, %v6551_v36  ;;  %v774_v15 = vld [vmem:[%s6249_s18 + $0xc8] sm:$0xff] }
  0x61   : > { %4777 = vmatprep.mubr.msk.f32.mxu1 %vm799_vm2, %v754_v37  ;;  %v6680_v37 = vld [vmem:[#allocation2 + $0xc1] sm:$0xff] }
  0x63   : > { %5386 = vmatmul.mubr.msk.f32.gmra.mrb[4].mxu0 %vm799_vm2, %v6560_v39 }
  0x64   : > { %923 = vmatmul.mubr.f32.gmra.mrb[20].mxu1 %v753_v40  ;;  %5388 = vmatprep.mubr.msk.f32.mxu0 %vm799_vm2, %v6564_v42  ;;  %v773_v40 = vld [vmem:[%s6249_s18 + $0xc0] sm:$0xff] }
  0x65   : > { %4778 = vmatprep.mubr.msk.f32.mxu1 %vm799_vm2, %v756_v43  ;;  %v6684_v43 = vld [vmem:[#allocation2 + $0xd1] sm:$0xff] }
  0x67   : > { %5389 = vmatmul.mubr.msk.f32.gmra.mrb[6].mxu0 %vm799_vm2, %v6571_v44 }
  0x68   : > { %928 = vmatmul.mubr.f32.gmra.mrb[22].mxu1 %v755_v45  ;;  %5391 = vmatprep.mubr.msk.f32.mxu0 %vm799_vm2, %v6575_v46  ;;  %v776_v45 = vld [vmem:[%s6249_s18 + $0xd8] sm:$0xff] }
  0x69   : > { %4779 = vmatprep.mubr.msk.f32.mxu1 %vm799_vm2, %v758_v48  ;;  %v6691_v48 = vld [vmem:[#allocation2 + $0xe1] sm:$0xff] }
  0x6b   : > { %5392 = vmatmul.mubr.msk.f32.gmra.mrb[8].mxu0 %vm799_vm2, %v6582_v49 }
  0x6c   : > { %933 = vmatmul.mubr.f32.gmra.mrb[24].mxu1 %v757_v50  ;;  %5394 = vmatprep.mubr.msk.f32.mxu0 %vm799_vm2, %v6586_v51  ;;  %v775_v50 = vld [vmem:[%s6249_s18 + $0xd0] sm:$0xff] }
  0x6d   : > { %4780 = vmatprep.mubr.msk.f32.mxu1 %vm799_vm2, %v760_v53  ;;  %v6695_v53 = vld [vmem:[#allocation2 + $0xf1] sm:$0xff] }
  0x6f   : > { %5395 = vmatmul.mubr.msk.f32.gmra.mrb[10].mxu0 %vm799_vm2, %v6593_v54 }
  0x70   : > { %938 = vmatmul.mubr.f32.gmra.mrb[26].mxu1 %v759_v55  ;;  %5397 = vmatprep.mubr.msk.f32.mxu0 %vm799_vm2, %v6597_v56  ;;  %v778_v55 = vld [vmem:[%s6249_s18 + $0xe8] sm:$0xff] }
  0x71   : > { %4781 = vmatprep.mubr.msk.f32.mxu1 %vm799_vm2, %v762_v57  ;;  %v6702_v57 = vld [vmem:[#allocation2 + $0x101] sm:$0xff] }
  0x73   : > { %5398 = vmatmul.mubr.msk.f32.gmra.mrb[12].mxu0 %vm799_vm2, %v6604_v58 }
  0x74   : > { %943 = vmatmul.mubr.f32.gmra.mrb[28].mxu1 %v761_v60  ;;  %5400 = vmatprep.mubr.msk.f32.mxu0 %vm799_vm2, %v6608_v61  ;;  %v777_v60 = vld [vmem:[%s6249_s18 + $0xe0] sm:$0xff] }
  0x75   : > { %4782 = vmatprep.mubr.msk.f32.mxu1 %vm799_vm2, %v764_v63  ;;  %v6706_v63 = vld [vmem:[#allocation2 + $0x111] sm:$0xff] }
  0x77   : > { %5401 = vmatmul.mubr.msk.f32.gmra.mrb[14].mxu0 %vm799_vm2, %v6615_v0 }
  0x78   : > { %948 = vmatmul.mubr.f32.gmra.mrb[30].mxu1 %v763_v1  ;;  %5407 = vmatprep.mubr.msk.f32.mxu0 %vm799_vm2, %v6619_v3  ;;  %v780_v1 = vld [vmem:[%s6249_s18 + $0xf8] sm:$0xff]  ;;  %s6161_s18 = smov 96  }
  0x79   : > { %4783 = vmatprep.mubr.msk.f32.mxu1 %vm799_vm2, %v766_v4  ;;  %v6713_v4 = vld [vmem:[#allocation2 + $0x121] sm:$0xff] }
  0x7b   : > { %5408 = vmatmul.mubr.msk.f32.vlgmr.msra.gmra.mrb[0].mxu0 %vm799_vm2, %v6632_v9 }
  0x7c   : > { %5729 = vmatpush3.bf16.msra.mxu0 %v6540_v33  ;;  %953 = vmatmul.mubr.f32.gmra.mrb[32].mxu1 %v765_v11  ;;  %v6673_v33 = vld [vmem:[#allocation2 + $0xb1] sm:$0xff] }
  0x7d   : > { %5410 = vmatprep.mubr.msk.f32.mxu0 %vm799_vm2, %v6636_v12  ;;  %4784 = vmatprep.mubr.msk.f32.mxu1 %vm799_vm2, %v768_v14  ;;  %v4915_v11 = vld [vmem:[%s7600_s5 + $0x70] sm:$0xff]  ;;  %v4916_v14 = vld [vmem:[%s7600_s5 + $0x78] sm:$0xff] }
  0x7e   : > { %5731 = vmatprep.subr.bf16.mxu0 %v6639_v16 }
  0x7f   : > { %5411 = vmatmul.mubr.msk.f32.gmra.mrb[2].mxu0 %vm799_vm2, %v6644_v17 }
  0x80   : > { %958 = vmatmul.mubr.f32.gmra.mrb[34].mxu1 %v767_v19  ;;  %5413 = vmatprep.mubr.msk.f32.mxu0 %vm799_vm2, %v6650_v20  ;;  %v5734_v19 = vpack.c.bf16 %v4916_v14, %v4915_v11 }
  0x81   : > { %4785 = vmatprep.mubr.msk.f32.mxu1 %vm799_vm2, %v770_v21 }
  0x83   : > { %5414 = vmatmul.mubr.msk.f32.gmra.mrb[4].mxu0 %vm799_vm2, %v6658_v22 }
  0x84   : > { %963 = vmatmul.mubr.f32.gmra.mrb[36].mxu1 %v769_v23  ;;  %5416 = vmatprep.mubr.msk.f32.mxu0 %vm799_vm2, %v6662_v24 }
  0x85   : > { %4786 = vmatprep.mubr.msk.f32.mxu1 %vm799_vm2, %v772_v25 }
  0x87   : > { %5417 = vmatmul.mubr.msk.f32.gmra.mrb[6].mxu0 %vm799_vm2, %v6669_v27 }
  0x88   : > { %968 = vmatmul.mubr.f32.gmra.mrb[38].mxu1 %v771_v32  ;;  %5419 = vmatprep.mubr.msk.f32.mxu0 %vm799_vm2, %v6673_v33 }
  0x89   : > { %4787 = vmatprep.mubr.msk.f32.mxu1 %vm799_vm2, %v774_v15 }
  0x8b   : > { %5420 = vmatmul.mubr.msk.f32.gmra.mrb[8].mxu0 %vm799_vm2, %v6680_v37 }
  0x8c   : > { %973 = vmatmul.mubr.f32.gmra.mrb[40].mxu1 %v773_v40  ;;  %5422 = vmatprep.mubr.msk.f32.mxu0 %vm799_vm2, %v6684_v43  ;;  %v3076_v40 = vld [vmem:[%s7601_s6] sm:$0xff] }
  0x8d   : > { %4788 = vmatprep.mubr.msk.f32.mxu1 %vm799_vm2, %v776_v45 }
  0x8f   : > { %5423 = vmatmul.mubr.msk.f32.gmra.mrb[10].mxu0 %vm799_vm2, %v6691_v48 }
  0x90   : > { %978 = vmatmul.mubr.f32.gmra.mrb[42].mxu1 %v775_v50  ;;  %5425 = vmatprep.mubr.msk.f32.mxu0 %vm799_vm2, %v6695_v53  ;;  %v3078_v50 = vld [vmem:[%s7601_s6 + $0x10] sm:$0xff] }
  0x91   : > { %4789 = vmatprep.mubr.msk.f32.mxu1 %vm799_vm2, %v778_v55 }
  0x93   : > { %5426 = vmatmul.mubr.msk.f32.gmra.mrb[12].mxu0 %vm799_vm2, %v6702_v57 }
  0x94   : > { %983 = vmatmul.mubr.f32.gmra.mrb[44].mxu1 %v777_v60  ;;  %5428 = vmatprep.mubr.msk.f32.mxu0 %vm799_vm2, %v6706_v63  ;;  %v3081_v60 = vld [vmem:[%s7601_s6 + $0x28] sm:$0xff] }
  0x95   : > { %4790 = vmatprep.mubr.msk.f32.mxu1 %vm799_vm2, %v780_v1  ;;  %v3082_v1 = vld [vmem:[%s7601_s6 + $0x30] sm:$0xff] }
  0x97   : > { %5429 = vmatmul.mubr.msk.f32.gmra.mrb[14].mxu0 %vm799_vm2, %v6713_v4 }
  0x98   : > { %988 = vmatmul.mubr.f32.gmra.mrb[46].mxu1 %v779_v6  ;;  %5435 = vmatprep.mubr.msk.f32.mxu0 %vm799_vm2, %v6375_v29  ;;  %v1019_v29 = vld [vmem:[#allocation2 + $0xa1] sm:$0xff] }
  0x99   : > { %5295 = vmatprep.mubr.msk.f32.mxu1 %vm799_vm2, %v1011_v7  ;;  %v6157_v7 = vmov 0.0  }
  0x9b   : > { %5436 = vmatmul.mubr.msk.f32.vlgmr.msra.gmra.mrb[0].mxu0 %vm799_vm2, %v6377_v31 }
  0x9c   : > { %5733 = vmatpush3.bf16.msra.mxu0 %v6639_v16  ;;  %5296 = vmatmul.mubr.msk.f32.vlgmr.msra.gmra.mrb[0].mxu1 %vm799_vm2, %v6619_v3  ;;  %v4933_v3 = vld [vmem:[%s7600_s5 + $0x80] sm:$0xff]  ;;  %v4934_v16 = vld [vmem:[%s7600_s5 + $0x88] sm:$0xff] }
  0x9d   : > { %5438 = vmatprep.mubr.msk.f32.mxu0 %vm799_vm2, %v6392_v35  ;;  %5298 = vmatprep.mubr.msk.f32.mxu1 %vm799_vm2, %v6632_v9  ;;  %v5738_v21 = vpack.c.bf16 %v4934_v16, %v4933_v3 }
  0x9e   : > { %5831 = vmatpush3.bf16.msra.mxu1 %v6327_v8  ;;  %5735 = vmatprep.subr.bf16.mxu0 %v5734_v19  ;;  %v6753_v8 = vld [vmem:[#allocation2 + $0x82] sm:$0xff] }
  0x9f   : > { %5439 = vmatmul.mubr.msk.f32.gmra.mrb[2].mxu0 %vm799_vm2, %v6395_v38  ;;  %5742 = vmatprep.subr.bf16.mxu1 %v6155_v28 }
  0xa0   : > { %5299 = vmatmul.mubr.msk.f32.gmra.mrb[2].mxu1 %vm799_vm2, %v6636_v12  ;;  %5441 = vmatprep.mubr.msk.f32.mxu0 %vm799_vm2, %v6407_v41 }
  0xa1   : > { %5301 = vmatprep.mubr.msk.f32.mxu1 %vm799_vm2, %v6644_v17 }
  0xa3   : > { %5442 = vmatmul.mubr.msk.f32.gmra.mrb[4].mxu0 %vm799_vm2, %v6420_v47 }
  0xa4   : > { %5302 = vmatmul.mubr.msk.f32.gmra.mrb[4].mxu1 %vm799_vm2, %v6650_v20  ;;  %5444 = vmatprep.mubr.msk.f32.mxu0 %vm799_vm2, %v6438_v52 }
  0xa5   : > { %5304 = vmatprep.mubr.msk.f32.mxu1 %vm799_vm2, %v6658_v22 }
  0xa7   : > { %5445 = vmatmul.mubr.msk.f32.gmra.mrb[6].mxu0 %vm799_vm2, %v6753_v8 }
  0xa8   : > { %5305 = vmatmul.mubr.msk.f32.gmra.mrb[6].mxu1 %vm799_vm2, %v6662_v24  ;;  %5447 = vmatprep.mubr.msk.f32.mxu0 %vm799_vm2, %v6455_v59  ;;  %v6786_v59 = vld [vmem:[#allocation2 + $0x122] sm:$0xff] }
  0xa9   : > { %5307 = vmatprep.mubr.msk.f32.mxu1 %vm799_vm2, %v1019_v29 }
  0xab   : > { %5448 = vmatmul.mubr.msk.f32.gmra.mrb[8].mxu0 %vm799_vm2, %v6458_v62 }
  0xac   : > { %5308 = vmatmul.mubr.msk.f32.gmra.mrb[8].mxu1 %vm799_vm2, %v6673_v33  ;;  %5450 = vmatprep.mubr.msk.f32.mxu0 %vm799_vm2, %v6474_v2 }
  0xad   : > { %5310 = vmatprep.mubr.msk.f32.mxu1 %vm799_vm2, %v6680_v37 }
  0xaf   : > { %5451 = vmatmul.mubr.msk.f32.gmra.mrb[10].mxu0 %vm799_vm2, %v6477_v5 }
  0xb0   : > { %5311 = vmatmul.mubr.msk.f32.gmra.mrb[10].mxu1 %vm799_vm2, %v6684_v43  ;;  %5453 = vmatprep.mubr.msk.f32.mxu0 %vm799_vm2, %v6493_v10 }
  0xb1   : > { %5313 = vmatprep.mubr.msk.f32.mxu1 %vm799_vm2, %v6691_v48 }
  0xb3   : > { %5454 = vmatmul.mubr.msk.f32.gmra.mrb[12].mxu0 %vm799_vm2, %v6496_v13 }
  0xb4   : > { %5314 = vmatmul.mubr.msk.f32.gmra.mrb[12].mxu1 %vm799_vm2, %v6695_v53  ;;  %5456 = vmatprep.mubr.msk.f32.mxu0 %vm799_vm2, %v6512_v18 }
  0xb5   : > { %5316 = vmatprep.mubr.msk.f32.mxu1 %vm799_vm2, %v6702_v57 }
  0xb7   : > { %5457 = vmatmul.mubr.msk.f32.gmra.mrb[14].mxu0 %vm799_vm2, %v6786_v59 }
  0xb8   : > { %5317 = vmatmul.mubr.msk.f32.gmra.mrb[14].mxu1 %vm799_vm2, %v6706_v63  ;;  %5463 = vmatprep.mubr.msk.f32.mxu0 %vm799_vm2, %v6534_v26 }
  0xb9   : > { %5326 = vmatprep.mubr.msk.f32.mxu1 %vm799_vm2, %v6534_v26  ;;  %v1001_v26 = vld [vmem:[#allocation2 + $0xa0] sm:$0xff] }
  0xbb   : > { %5464 = vmatmul.mubr.msk.f32.vlgmr.msra.gmra.mrb[0].mxu0 %vm799_vm2, %v6537_v30 }
  0xbc   : > { %5737 = vmatpush3.bf16.msra.mxu0 %v5734_v19  ;;  %5327 = vmatmul.mubr.msk.f32.vlgmr.msra.gmra.mrb[2].mxu1 %vm799_vm2, %v6537_v30  ;;  %v2337_v30 = vld [vmem:[#allocation2 + $0x90] sm:$0xff] }
  0xbd   : > { %5466 = vmatprep.mubr.msk.f32.mxu0 %vm799_vm2, %v6545_v34  ;;  %5329 = vmatprep.mubr.msk.f32.mxu1 %vm799_vm2, %v6545_v34  ;;  %v2345_v34 = vld [vmem:[#allocation2 + $0x130] sm:$0xff] }
  0xbe   : > { %5739 = vmatprep.subr.bf16.mxu0 %v5738_v21 }
  0xbf   : > { %5467 = vmatmul.mubr.msk.f32.gmra.mrb[2].mxu0 %vm799_vm2, %v6551_v36 }
  0xc0   : > { %5330 = vmatmul.mubr.msk.f32.gmra.mrb[4].mxu1 %vm799_vm2, %v6551_v36  ;;  %5469 = vmatprep.mubr.msk.f32.mxu0 %vm799_vm2, %v6560_v39  ;;  %v2565_v36 = vld [vmem:[#allocation2 + $0x91] sm:$0xff] }
  0xc1   : > { %5332 = vmatprep.mubr.msk.f32.mxu1 %vm799_vm2, %v6560_v39  ;;  %v2573_v39 = vld [vmem:[#allocation2 + $0x131] sm:$0xff] }
  0xc3   : > { %5470 = vmatmul.mubr.msk.f32.gmra.mrb[4].mxu0 %vm799_vm2, %v6564_v42 }
  0xc4   : > { %5333 = vmatmul.mubr.msk.f32.gmra.mrb[6].mxu1 %vm799_vm2, %v6564_v42  ;;  %5472 = vmatprep.mubr.msk.f32.mxu0 %vm799_vm2, %v6571_v44  ;;  %v2793_v42 = vld [vmem:[#allocation2 + $0x92] sm:$0xff] }
  0xc5   : > { %5335 = vmatprep.mubr.msk.f32.mxu1 %vm799_vm2, %v1001_v26 }
  0xc7   : > { %5473 = vmatmul.mubr.msk.f32.gmra.mrb[6].mxu0 %vm799_vm2, %v2337_v30 }
  0xc8   : > { %5336 = vmatmul.mubr.msk.f32.gmra.mrb[8].mxu1 %vm799_vm2, %v6575_v46  ;;  %5475 = vmatprep.mubr.msk.f32.mxu0 %vm799_vm2, %v6582_v49 }
  0xc9   : > { %5338 = vmatprep.mubr.msk.f32.mxu1 %vm799_vm2, %v6582_v49 }
  0xcb   : > { %5476 = vmatmul.mubr.msk.f32.gmra.mrb[8].mxu0 %vm799_vm2, %v6586_v51 }
  0xcc   : > { %5339 = vmatmul.mubr.msk.f32.gmra.mrb[10].mxu1 %vm799_vm2, %v6586_v51  ;;  %5478 = vmatprep.mubr.msk.f32.mxu0 %vm799_vm2, %v6593_v54 }
  0xcd   : > { %5341 = vmatprep.mubr.msk.f32.mxu1 %vm799_vm2, %v6593_v54 }
  0xcf   : > { %5479 = vmatmul.mubr.msk.f32.gmra.mrb[10].mxu0 %vm799_vm2, %v6597_v56 }
  0xd0   : > { %5342 = vmatmul.mubr.msk.f32.gmra.mrb[12].mxu1 %vm799_vm2, %v6597_v56  ;;  %5481 = vmatprep.mubr.msk.f32.mxu0 %vm799_vm2, %v6604_v58 }
  0xd1   : > { %5344 = vmatprep.mubr.msk.f32.mxu1 %vm799_vm2, %v6604_v58 }
  0xd3   : > { %5482 = vmatmul.mubr.msk.f32.gmra.mrb[12].mxu0 %vm799_vm2, %v6608_v61 }
  0xd4   : > { %5345 = vmatmul.mubr.msk.f32.gmra.mrb[14].mxu1 %vm799_vm2, %v6608_v61  ;;  %5484 = vmatprep.mubr.msk.f32.mxu0 %vm799_vm2, %v6615_v0 }
  0xd5   : > { %5559 = vmatprep.mubr.msk.f32.mxu1 %vm6156_vm5, %v6157_v7 }
  0xd7   : > { %5485 = vmatmul.mubr.msk.f32.gmra.mrb[14].mxu0 %vm799_vm2, %v2345_v34 }
  0xd8   : > { %5491 = vmatprep.mubr.msk.f32.mxu0 %vm799_vm2, %v6632_v9 }
  0xdb   : > { %5492 = vmatmul.mubr.msk.f32.vlgmr.msra.gmra.mrb[0].mxu0 %vm799_vm2, %v6636_v12 }
  0xdc   : > { %5741 = vmatpush3.bf16.msra.mxu0 %v5738_v21  ;;  %5494 = vmatprep.mubr.msk.f32.mxu0 %vm799_vm2, %v6644_v17 }
  0xdf   : > { %5495 = vmatmul.mubr.msk.f32.gmra.mrb[2].mxu0 %vm799_vm2, %v6650_v20 }
  0xe0   : > { %5497 = vmatprep.mubr.msk.f32.mxu0 %vm799_vm2, %v6658_v22 }
  0xe3   : > { %5498 = vmatmul.mubr.msk.f32.gmra.mrb[4].mxu0 %vm799_vm2, %v6662_v24 }
  0xe4   : > { %5500 = vmatprep.mubr.msk.f32.mxu0 %vm799_vm2, %v6669_v27 }
  0xe7   : > { %5501 = vmatmul.mubr.msk.f32.gmra.mrb[6].mxu0 %vm799_vm2, %v2565_v36 }
  0xe8   : > { %5503 = vmatprep.mubr.msk.f32.mxu0 %vm799_vm2, %v6680_v37 }
  0xeb   : > { %5504 = vmatmul.mubr.msk.f32.gmra.mrb[8].mxu0 %vm799_vm2, %v6684_v43  ;;  %v3077_v43 = vld [vmem:[%s7601_s6 + $0x8] sm:$0xff] }
  0xec   : > { %5506 = vmatprep.mubr.msk.f32.mxu0 %vm799_vm2, %v6691_v48  ;;  %v5743_v48 = vpack.c.bf16 %v3077_v43, %v3076_v40 }
  0xee   : > { %5744 = vmatpush3.bf16.msra.mxu1 %v5743_v48 }
  0xef   : > { %5507 = vmatmul.mubr.msk.f32.gmra.mrb[10].mxu0 %vm799_vm2, %v6695_v53  ;;  %5745 = vmatprep.subr.bf16.mxu1 %v6155_v28  ;;  %v3079_v53 = vld [vmem:[%s7601_s6 + $0x18] sm:$0xff] }
  0xf0   : > { %5509 = vmatprep.mubr.msk.f32.mxu0 %vm799_vm2, %v6702_v57  ;;  %v5746_v55 = vpack.c.bf16 %v3079_v53, %v3078_v50  ;;  %v3080_v57 = vld [vmem:[%s7601_s6 + $0x20] sm:$0xff] }
  0xf2   : > { %5747 = vmatpush3.bf16.msra.mxu1 %v5746_v55 }
  0xf3   : > { %5510 = vmatmul.mubr.msk.f32.gmra.mrb[12].mxu0 %vm799_vm2, %v6706_v63  ;;  %5748 = vmatprep.subr.bf16.mxu1 %v6155_v28  ;;  %v5749_v63 = vpack.c.bf16 %v3081_v60, %v3080_v57 }
  0xf4   : > { %5512 = vmatprep.mubr.msk.f32.mxu0 %vm799_vm2, %v6713_v4  ;;  %v3083_v4 = vld [vmem:[%s7601_s6 + $0x38] sm:$0xff] }
  0xf5   : > { %v5752_v6 = vpack.c.bf16 %v3083_v4, %v3082_v1 }
  0xf6   : > { %5750 = vmatpush3.bf16.msra.mxu1 %v5749_v63 }
  0xf7   : > { %5513 = vmatmul.mubr.msk.f32.gmra.mrb[14].mxu0 %vm799_vm2, %v2573_v39  ;;  %5751 = vmatprep.subr.bf16.mxu1 %v6155_v28 }
  0xf8   : > { %5519 = vmatprep.mubr.msk.f32.mxu0 %vm799_vm2, %v6377_v31  ;;  %v2801_v31 = vld [vmem:[#allocation2 + $0x132] sm:$0xff] }
  0xfa   : > { %5753 = vmatpush3.bf16.msra.mxu1 %v5752_v6 }
  0xfb   : > { %5520 = vmatmul.mubr.msk.f32.vlgmr.msra.gmra.mrb[0].mxu0 %vm799_vm2, %v6392_v35  ;;  %5562 = vmatprep.subr.mxu1 %v6157_v7 }
  0xfc   : > { %5522 = vmatprep.mubr.msk.f32.mxu0 %vm799_vm2, %v6395_v38 }
  0xff   : > { %5523 = vmatmul.mubr.msk.f32.gmra.mrb[2].mxu0 %vm799_vm2, %v6407_v41 }
 0x100   : > { %5525 = vmatprep.mubr.msk.f32.mxu0 %vm799_vm2, %v6420_v47 }
 0x103   : > { %5526 = vmatmul.mubr.msk.f32.gmra.mrb[4].mxu0 %vm799_vm2, %v6438_v52 }
 0x104   : > { %5528 = vmatprep.mubr.msk.f32.mxu0 %vm799_vm2, %v6753_v8 }
 0x107   : > { %5529 = vmatmul.mubr.msk.f32.gmra.mrb[6].mxu0 %vm799_vm2, %v2793_v42  ;;  %v6986_v42 = vld [vmem:[%s7598_s3] ss:$0 sm:$0xff] }
 0x108   : > { %5531 = vmatprep.mubr.msk.f32.mxu0 %vm799_vm2, %v6458_v62 }
 0x10b   : > { %5532 = vmatmul.mubr.msk.f32.gmra.mrb[8].mxu0 %vm799_vm2, %v6474_v2 }
 0x10c   : > { %5534 = vmatprep.mubr.msk.f32.mxu0 %vm799_vm2, %v6477_v5 }
 0x10f   : > { %5535 = vmatmul.mubr.msk.f32.gmra.mrb[10].mxu0 %vm799_vm2, %v6493_v10 }
 0x110   : > { %5537 = vmatprep.mubr.msk.f32.mxu0 %vm799_vm2, %v6496_v13 }
 0x113   : > { %5538 = vmatmul.mubr.msk.f32.gmra.mrb[12].mxu0 %vm799_vm2, %v6512_v18 }
 0x114   : > { %5540 = vmatprep.mubr.msk.f32.mxu0 %vm799_vm2, %v6786_v59 }
 0x117   : > { %5541 = vmatmul.mubr.msk.f32.gmra.mrb[14].mxu0 %vm799_vm2, %v2801_v31 }
 0x12f   : > { %v6917_v35 = vpop.f32.mrb[16].mxu1 }
 0x130   : > { %v916_v38 = vpop.f32.mrb[17].mxu1 }
 0x133   : > { %v6919_v41 = vpop.f32.mrb[18].mxu1 }
 0x134   : > { %v921_v47 = vpop.f32.mrb[19].mxu1 }
 0x137   : > { %v6921_v52 = vpop.f32.mrb[20].mxu1 }
 0x138   : > { %v926_v62 = vpop.f32.mrb[21].mxu1 }
 0x13b   : > { %v6923_v2 = vpop.f32.mrb[22].mxu1 }
 0x13c   : > { %v931_v5 = vpop.f32.mrb[23].mxu1 }
 0x13f   : > { %v6925_v10 = vpop.f32.mrb[24].mxu1 }
 0x140   : > { %v936_v13 = vpop.f32.mrb[25].mxu1 }
 0x143   : > { %v6927_v18 = vpop.f32.mrb[26].mxu1 }
 0x144   : > { %v941_v44 = vpop.f32.mrb[27].mxu1 }
 0x147   : > { %v6929_v46 = vpop.f32.mrb[28].mxu1 }
 0x148   : > { %v946_v49 = vpop.f32.mrb[29].mxu1 }
 0x14b   : > { %v6931_v51 = vpop.f32.mrb[30].mxu1 }
 0x14c   : > { %v951_v54 = vpop.f32.mrb[31].mxu1 }
 0x14f   : > { %v6933_v56 = vpop.f32.mrb[32].mxu1 }
 0x150   : > { %v956_v58 = vpop.f32.mrb[33].mxu1 }
 0x153   : > { %v6935_v61 = vpop.f32.mrb[34].mxu1 }
 0x154   : > { %v961_v0 = vpop.f32.mrb[35].mxu1 }
 0x157   : > { %v6937_v9 = vpop.f32.mrb[36].mxu1 }
 0x158   : > { %v966_v12 = vpop.f32.mrb[37].mxu1 }
 0x15b   : > { %v6939_v17 = vpop.f32.mrb[38].mxu1 }
 0x15c   : > { %v971_v20 = vpop.f32.mrb[39].mxu1 }
 0x15f   : > { %v6941_v22 = vpop.f32.mrb[40].mxu1 }
 0x160   : > { %v976_v23 = vpop.f32.mrb[41].mxu1 }
 0x163   : > { %v6943_v24 = vpop.f32.mrb[42].mxu1 }
 0x164   : > { %v981_v25 = vpop.f32.mrb[43].mxu1 }
 0x167   : > { %v6945_v27 = vpop.f32.mrb[44].mxu1 }
 0x168   : > { %v986_v32 = vpop.f32.mrb[45].mxu1 }
 0x16b   : > { %v6947_v33 = vpop.f32.mrb[46].mxu1 }
 0x16c   : > { %v991_v15 = vpop.f32.mrb[47].mxu1 }
 0x16f   : > { %v5297_v37 = vpop.f32.mrb[0].mxu1 }
 0x170   : > { %v1144_v45 = vpop.f32.mrb[1].mxu1  ;;  %v5832_v31 = vadd.f32 %v5297_v37, %v6986_v42 }
 0x171   : > { %v5834_v38 = vadd.f32 %v6986_v42, %v1144_v45 }
 0x18f   : > { %v5328_v11 = vpop.f32.mrb[2].mxu1 }
 0x190   : > { %v1347_v14 = vpop.f32.mrb[3].mxu1  ;;  %v5836_v44 = vadd.f32 %v5328_v11, %v6986_v42 }
 0x191   : > { %v5838_v49 = vadd.f32 %v6986_v42, %v1347_v14 }
 0x193   : > { %v5331_v19 = vpop.f32.mrb[4].mxu1 }
 0x194   : > { %v1357_v8 = vpop.f32.mrb[5].mxu1  ;;  %v5840_v25 = vadd.f32 %v5331_v19, %v6986_v42 }
 0x195   : > { %v5842_v15 = vadd.f32 %v6986_v42, %v1357_v8 }
 0x197   : > { %v5334_v29 = vpop.f32.mrb[6].mxu1 }
 0x198   : > { %v1367_v59 = vpop.f32.mrb[7].mxu1  ;;  %v5844_v55 = vadd.f32 %v5334_v29, %v6986_v42 }
 0x199   : > { %v5846_v60 = vadd.f32 %v6986_v42, %v1367_v59 }
 0x19b   : > { %v5337_v3 = vpop.f32.mrb[8].mxu1 }
 0x19c   : > { %v1377_v16 = vpop.f32.mrb[9].mxu1  ;;  %v5848_v8 = vadd.f32 %v5337_v3, %v6986_v42 }
 0x19d   : > { %v5850_v29 = vadd.f32 %v6986_v42, %v1377_v16 }
 0x19f   : > { %v5340_v21 = vpop.f32.mrb[10].mxu1 }
 0x1a0   : > { %v1387_v26 = vpop.f32.mrb[11].mxu1 }
 0x1a3   : > { %v5343_v30 = vpop.f32.mrb[12].mxu1 }
 0x1a4   : > { %v1397_v34 = vpop.f32.mrb[13].mxu1 }
 0x1a7   : > { %v6979_v36 = vpop.f32.mrb[14].mxu1 }
 0x1a8   : > { %v6981_v39 = vpop.f32.mrb[15].mxu1 }
 0x1ce   : > { %v5521_v47 = vpop.f32.mrb[0].mxu0 }
 0x1cf   : > { %v6990_v62 = vadd.f32 %v5832_v31, %v5521_v47  ;;  %v2919_v5 = vpop.f32.mrb[1].mxu0 }
 0x1d0   : > { %v6992_v13 = vadd.f32 %v5834_v38, %v2919_v5 }
 0x1d1   : > { %v3032_v54 = vsel %vm3030_vm6, %v6990_v62, 0.0 }
 0x1d2   : > { %v3031_v58 = vsel %vm3030_vm6, %v6992_v13, 0.0  ;;  %v5524_v0 = vpop.f32.mrb[2].mxu0 }
 0x1d3   : > { %v7000_v12 = vadd.f32 %v5836_v44, %v5524_v0  ;;  %v2929_v20 = vpop.f32.mrb[3].mxu0  ;;  %v3033_v32 = vadd.f32 %v3032_v54, %v3031_v58  ;;  %v5852_v54 = vadd.f32 %v5340_v21, %v6986_v42  ;;  %v5854_v58 = vadd.f32 %v6986_v42, %v1387_v26 }
 0x1d4   : > { %v7002_v23 = vadd.f32 %v5838_v49, %v2929_v20  ;;  %v5856_v21 = vadd.f32 %v5343_v30, %v6986_v42  ;;  %v5858_v26 = vadd.f32 %v6986_v42, %v1397_v34  ;;  %v5860_v30 = vadd.f32 %v6979_v36, %v6986_v42 }
 0x1d5   : > { %v3036_v50 = vsel %vm3030_vm6, %v7000_v12, 0.0  ;;  %v5862_v34 = vadd.f32 %v6986_v42, %v6981_v39 }
 0x1d6   : > { %v3034_v37 = vsel %vm3030_vm6, %v7002_v23, 0.0  ;;  %v5527_v40 = vpop.f32.mrb[4].mxu0 }
 0x1d7   : > { %v3035_v43 = vadd.f32 %v3034_v37, %v3033_v32  ;;  %v7008_v45 = vadd.f32 %v5840_v25, %v5527_v40  ;;  %v2939_v48 = vpop.f32.mrb[5].mxu0 }
 0x1d8   : > { %v7012_v53 = vadd.f32 %v5842_v15, %v2939_v48 }
 0x1d9   : > { %v3037_v57 = vadd.f32 %v3036_v50, %v3035_v43  ;;  %v3040_v14 = vsel %vm3030_vm6, %v7008_v45, 0.0 }
 0x1da   : > { %v3038_v63 = vsel %vm3030_vm6, %v7012_v53, 0.0  ;;  %v5530_v1 = vpop.f32.mrb[6].mxu0 }
 0x1db   : > { %v3039_v4 = vadd.f32 %v3038_v63, %v3037_v57  ;;  %v7018_v6 = vadd.f32 %v5844_v55, %v5530_v1  ;;  %v2949_v11 = vpop.f32.mrb[7].mxu0 }
 0x1dc   : > { %v7022_v19 = vadd.f32 %v5846_v60, %v2949_v11 }
 0x1dd   : > { %v3041_v31 = vadd.f32 %v3040_v14, %v3039_v4  ;;  %v3044_v3 = vsel %vm3030_vm6, %v7018_v6, 0.0 }
 0x1de   : > { %v3042_v59 = vsel %vm3030_vm6, %v7022_v19, 0.0  ;;  %v5533_v38 = vpop.f32.mrb[8].mxu0 }
 0x1df   : > { %v3043_v47 = vadd.f32 %v3042_v59, %v3041_v31  ;;  %v7028_v5 = vadd.f32 %v5848_v8, %v5533_v38  ;;  %v2959_v44 = vpop.f32.mrb[9].mxu0 }
 0x1e0   : > { %v7030_v49 = vadd.f32 %v5850_v29, %v2959_v44 }
 0x1e1   : > { %v3053_v16 = vsel %vm3030_vm6, %v7028_v5, 0.0  ;;  %v3045_v25 = vadd.f32 %v3044_v3, %v3043_v47 }
 0x1e2   : > { %v3052_v0 = vsel %vm3030_vm6, %v7030_v49, 0.0  ;;  %v5536_v20 = vpop.f32.mrb[10].mxu0 }
 0x1e3   : > { %v7040_v32 = vadd.f32 %v5852_v54, %v5536_v20  ;;  %v2969_v15 = vpop.f32.mrb[11].mxu0  ;;  %v3054_v40 = vadd.f32 %v3053_v16, %v3052_v0  ;;  %v3046_v50 = vrot.slane %v3045_v25, 4 }
 0x1e4   : > { %v7042_v37 = vadd.f32 %v5854_v58, %v2969_v15 }
 0x1e5   : > { %v3057_v63 = vsel %vm3030_vm6, %v7040_v32, 0.0  ;;  %v3047_v8 = vadd.f32 %v3046_v50, %v3045_v25 }
 0x1e6   : > { %v3055_v43 = vsel %vm3030_vm6, %v7042_v37, 0.0  ;;  %v5539_v48 = vpop.f32.mrb[12].mxu0 }
 0x1e7   : > { %v3056_v55 = vadd.f32 %v3055_v43, %v3054_v40  ;;  %v7048_v57 = vadd.f32 %v5856_v21, %v5539_v48  ;;  %v2979_v60 = vpop.f32.mrb[13].mxu0  ;;  %v3048_v54 = vrot.slane %v3047_v8, 2 }
 0x1e8   : > { %v7052_v1 = vadd.f32 %v5858_v26, %v2979_v60  ;;  %v4951_v60 = vld [vmem:[%s7602_s7] ss:$0 sm:$0xff] }
 0x1e9   : > { %v3058_v4 = vadd.f32 %v3057_v63, %v3056_v55  ;;  %v3061_v38 = vsel %vm3030_vm6, %v7048_v57, 0.0  ;;  %v3049_v3 = vadd.f32 %v3048_v54, %v3047_v8  ;;  %v3168_v55 = vld [vmem:[%s7603_s8] sm:$0xf] }
 0x1ea   : > { %v3059_v11 = vsel %vm3030_vm6, %v7052_v1, 0.0  ;;  %v5542_v14 = vpop.f32.mrb[14].mxu0 }
 0x1eb   : > { %v3060_v31 = vadd.f32 %v3059_v11, %v3058_v4  ;;  %v7060_v29 = vadd.f32 %v5860_v30, %v5542_v14  ;;  %v2989_v59 = vpop.f32.mrb[15].mxu0  ;;  %v3050_v20 = vrot.slane %v3049_v3, 1  ;;  %v4953_v11 = vld [vmem:[%s7604_s9] ss:$0 sm:$0xff] }
 0x1ec   : > { %v7064_v47 = vadd.f32 %v5862_v34, %v2989_v59 }
 0x1ed   : > { %v3062_v44 = vadd.f32 %v3061_v38, %v3060_v31  ;;  %v3065_v42 = vsel %vm3030_vm6, %v7060_v29, 0.0  ;;  %v3051_v21 = vadd.f32 %v3050_v20, %v3049_v3 }
 0x1ee   : > { %v3063_v36 = vsel %vm3030_vm6, %v7064_v47, 0.0 }
 0x1ef   : > { %v3064_v39 = vadd.f32 %v3063_v36, %v3062_v44  ;;  %v3074_v43 = vmul.f32 0.015625, %v3051_v21  ;;  %v6158_v36 = vmov 1966171168  }
 0x1f0   : > { %v3261_v54 = vunpack.c.l.s4 %v6158_v36 }
 0x1f1   : > { %v3066_v58 = vadd.f32 %v3065_v42, %v3064_v39  ;;  %v3263_v39 = vlaneseq }
 0x1f2   : > { %v3262_v42 = vunpack.c.0.s8 %v3261_v54 }
 0x1f3   : > { %v3067_v16 = vrot.slane %v3066_v58, 4 }
 0x1f5   : > { %v3068_v0 = vadd.f32 %v3067_v16, %v3066_v58  ;;  %v3264_v58 = vshrl.u32 %v3263_v39, 7 }
 0x1f7   : > { %v3069_v25 = vrot.slane %v3068_v0, 2  ;;  %v3265_v3 = vsub.s32 %v3262_v42, %v3264_v58  ;;  %v3284_v20 = vsub.s32 0, %v3264_v58 }
 0x1f9   : > { %v3070_v15 = vadd.f32 %v3069_v25, %v3068_v0 }
 0x1fb   : > { %v3071_v40 = vrot.slane %v3070_v15, 1 }
 0x1fd   : > { %v3072_v26 = vadd.f32 %v3071_v40, %v3070_v15 }
 0x1ff   : > { %v3075_v48 = vmul.f32 0.015625, %v3072_v26 }
 0x201   : > { %v3094_v50 = vsel %vm3093_vm7, %v3075_v48, %v3074_v43 }
 0x202   : > { %5560 = vmatmul.mubr.msk.f32.vlgmr.msra.gmra.mrb[48].mxu1 %vm3030_vm6, %v3094_v50 }
 0x203   : > { %5564 = vmatprep.mubr.msk.f32.mxu1 %vm6156_vm5, %v6157_v7  ;;  %5563 = vmatpush3.msk.msra.mxu1 %vm600_vm4, %v3168_v55 }
 0x2d5   : > { %v3163_v63 = vpop.f32.mrb[48].mxu1 }
 0x2d6   : > { %v3164_v30 = vadd.f32 %v4951_v60, %v3163_v63  ;;  %v5561_v4 = vpop.f32.mrb[49].mxu1 }
 0x2d8   : > { %v3167_v34 = vmax.f32 %v3164_v30, 0.0 }
 0x2da   : > { %5565 = vmatmul.mubr.msk.f32.vlgmr.msra.gmra.mrb[50].mxu1 %vm3176_vm8, %v3167_v34 }
 0x3ad   : > { %v3249_v14 = vpop.f32.mrb[50].mxu1 }
 0x3ae   : > { %v3250_v8 = vadd.f32 %v4953_v11, %v3249_v14  ;;  %v5566_v31 = vpop.f32.mrb[51].mxu1  ;;  %v3436_v11 = vld [vmem:[#allocation3] sm:$0xff]  ;;  %v3438_v14 = vld [vmem:[#allocation3 + $0x10] sm:$0xff] }
 0x3af   : > { %v3440_v31 = vld [vmem:[#allocation3 + $0x20] sm:$0xff] }
 0x3b0   : > { %v4956_v59 = vmul.f32 -1.442695, %v3250_v8  ;;  %v3439_v8 = vld [vmem:[#allocation3 + $0x18] sm:$0xff] }
 0x3b2   : > { %6014 = vpow2.f32 %v4956_v59  ;;  %v3441_v59 = vld [vmem:[#allocation3 + $0x28] sm:$0xff] }
 0x3bc   : > { %v6015_v38 = vpop.eup %6014 }
 0x3bd   : > { %v3256_v44 = vadd.f32 1.0, %v6015_v38  ;;  %v3442_v38 = vld [vmem:[#allocation3 + $0x30] sm:$0xff] }
 0x3bf   : > { %6016 = vrcp.f32 %v3256_v44  ;;  %v3443_v44 = vld [vmem:[#allocation3 + $0x38] sm:$0xff] }
 0x3c9   : > { %v6017_v16 = vpop.eup %6016 }
 0x3ca   : > { %v3266_v0 = vrot.slane %v6017_v16, %v3265_v3 }
 0x3cc   : > { %v3267_v25 = vcombine.high %v3266_v0, %v3266_v0  ;;  %v3274_v15 = vrot.slane %v3266_v0, %v3265_v3 }
 0x3ce   : > { %v3281_v21 = vrot.slane %v3267_v25, %v3265_v3  ;;  %v3285_v40 = vrot.slane %v3274_v15, %v3284_v20 }
 0x3d0   : > { %v3289_v26 = vrot.slane %v3281_v21, %v3284_v20  ;;  %v3294_v43 = vmul.f32 %v7002_v23, %v3285_v40  ;;  %v3292_v48 = vmul.f32 %v6992_v13, %v3285_v40  ;;  %v3295_v50 = vmul.f32 %v7000_v12, %v3285_v40 }
 0x3d1   : > { %v3293_v55 = vmul.f32 %v6990_v62, %v3285_v40  ;;  %v3297_v60 = vmul.f32 %v7008_v45, %v3285_v40  ;;  %v3296_v63 = vmul.f32 %v7012_v53, %v3285_v40  ;;  %v3299_v30 = vmul.f32 %v7018_v6, %v3285_v40 }
 0x3d2   : > { %v7091_v4 = vadd.f32 %v3294_v43, %v6921_v52  ;;  %v7094_v34 = vadd.f32 %v3292_v48, %v6917_v35  ;;  %v7097_v23 = vadd.f32 %v3295_v50, %v6923_v2  ;;  %v3298_v13 = vmul.f32 %v7022_v19, %v3285_v40 }
 0x3d3   : > { %v7101_v12 = vadd.f32 %v3293_v55, %v6919_v41  ;;  %v7104_v62 = vadd.f32 %v3297_v60, %v6927_v18  ;;  %v7107_v45 = vadd.f32 %v3296_v63, %v6925_v10  ;;  %v7110_v52 = vadd.f32 %v3299_v30, %v6931_v51 }
 0x3d4   : > { %6018 = vtanh.f32 %v7091_v4  ;;  %v7115_v35 = vadd.f32 %v3298_v13, %v6929_v46  ;;  %v3301_v2 = vmul.f32 %v7028_v5, %v3289_v26  ;;  %v3300_v41 = vmul.f32 %v7030_v49, %v3289_v26 }
 0x3d5   : > { %6020 = vtanh.f32 %v7094_v34  ;;  %v3303_v18 = vmul.f32 %v7040_v32, %v3289_v26  ;;  %v3302_v53 = vmul.f32 %v7042_v37, %v3289_v26  ;;  %v3305_v51 = vmul.f32 %v7048_v57, %v3289_v26 }
 0x3d6   : > { %v7122_v10 = vadd.f32 %v3301_v2, %v6935_v61  ;;  %6022 = vtanh.f32 %v7097_v23  ;;  %v7127_v6 = vadd.f32 %v3300_v41, %v6933_v56  ;;  %v3304_v61 = vmul.f32 %v7052_v1, %v3289_v26 }
 0x3d7   : > { %v7130_v46 = vadd.f32 %v3303_v18, %v6939_v17  ;;  %v7133_v19 = vadd.f32 %v3302_v53, %v6937_v9  ;;  %6024 = vtanh.f32 %v7101_v12  ;;  %v7137_v5 = vadd.f32 %v3305_v51, %v6943_v24 }
 0x3d8   : > { %v7141_v49 = vadd.f32 %v3304_v61, %v6941_v22  ;;  %v3307_v32 = vmul.f32 %v7060_v29, %v3289_v26  ;;  %6026 = vtanh.f32 %v7104_v62  ;;  %v3306_v56 = vmul.f32 %v7064_v47, %v3289_v26  ;;  %v3437_v47 = vld [vmem:[#allocation3 + $0x8] sm:$0xff] }
 0x3d9   : > { %6028 = vtanh.f32 %v7107_v45  ;;  %v4957_v36 = vmul.f32 -1.442695, %v7094_v34  ;;  %v4958_v54 = vmul.f32 -1.442695, %v7101_v12  ;;  %v4959_v39 = vmul.f32 -1.442695, %v7091_v4 }
 0x3da   : > { %v7148_v9 = vadd.f32 %v3307_v32, %v6947_v33  ;;  %v7152_v24 = vadd.f32 %v3306_v56, %v6945_v27  ;;  %6030 = vtanh.f32 %v7110_v52  ;;  %v4964_v42 = vmul.f32 -1.442695, %v7110_v52 }
 0x3db   : > { %6032 = vtanh.f32 %v7115_v35  ;;  %v4960_v58 = vmul.f32 -1.442695, %v7097_v23  ;;  %v4961_v16 = vmul.f32 -1.442695, %v7107_v45  ;;  %v4962_v25 = vmul.f32 -1.442695, %v7104_v62 }
 0x3dc   : > { %6034 = vpow2.f32 %v4957_v36  ;;  %v4963_v40 = vmul.f32 -1.442695, %v7115_v35 }
 0x3dd   : > { %6036 = vpow2.f32 %v4958_v54 }
 0x3de   : > { %v6019_v17 = vpop.eup %6018  ;;  %6038 = vpow2.f32 %v4959_v39 }
 0x3df   : > { %v6021_v37 = vpop.eup %6020  ;;  %3552 = vrot.lane.b32.xlu1 %v6019_v17, %s6159_s19  ;;  %6040 = vpow2.f32 %v4964_v42 }
 0x3e0   : > { %3548 = vrot.lane.b32.xlu0 %v6021_v37, %s6159_s19  ;;  %v6023_v22 = vpop.eup %6022  ;;  %6042 = vpow2.f32 %v4960_v58 }
 0x3e1   : > { %v6025_v57 = vpop.eup %6024  ;;  %6044 = vpow2.f32 %v4961_v16 }
 0x3e2   : > { %v6027_v33 = vpop.eup %6026 }
 0x3e3   : > { %3554 = vrot.lane.b32.xlu1 %v6023_v22, %s6159_s19  ;;  %v6029_v1 = vpop.eup %6028 }
 0x3e4   : > { %3550 = vrot.lane.b32.xlu0 %v6025_v57, %s6159_s19  ;;  %v6031_v27 = vpop.eup %6030 }
 0x3e5   : > { %v6033_v29 = vpop.eup %6032 }
 0x3e6   : > { %v6035_v3 = vpop.eup %6034 }
 0x3e7   : > { %3558 = vrot.lane.b32.xlu1 %v6027_v33, %s6159_s19  ;;  %v3372_v0 = vadd.f32 1.0, %v6035_v3  ;;  %v6037_v20 = vpop.eup %6036 }
 0x3e8   : > { %3556 = vrot.lane.b32.xlu0 %v6029_v1, %s6159_s19  ;;  %v3373_v15 = vadd.f32 1.0, %v6037_v20  ;;  %v6039_v21 = vpop.eup %6038 }
 0x3e9   : > { %6046 = vrcp.f32 %v3372_v0  ;;  %v6041_v26 = vpop.eup %6040  ;;  %v3374_v43 = vadd.f32 1.0, %v6039_v21 }
 0x3ea   : > { %6048 = vpow2.f32 %v4962_v25  ;;  %v6043_v48 = vpop.eup %6042  ;;  %v3379_v50 = vadd.f32 1.0, %v6041_v26 }
 0x3eb   : > { %3562 = vrot.lane.b32.xlu1 %v6031_v27, %s6159_s19  ;;  %6050 = vrcp.f32 %v3373_v15  ;;  %v6045_v55 = vpop.eup %6044  ;;  %v3375_v63 = vadd.f32 1.0, %v6043_v48 }
 0x3ec   : > { %3560 = vrot.lane.b32.xlu0 %v6033_v29, %s6159_s19  ;;  %6052 = vpow2.f32 %v4963_v40  ;;  %v3376_v23 = vadd.f32 1.0, %v6045_v55 }
 0x3ed   : > { %6054 = vrcp.f32 %v3374_v43 }
 0x3ee   : > { %6056 = vrcp.f32 %v3379_v50 }
 0x3ef   : > { %3470 = vrot.lane.b32.xlu1 %v3437_v47, %s6160_s20  ;;  %6058 = vrcp.f32 %v3375_v63 }
 0x3f0   : > { %3468 = vrot.lane.b32.xlu0 %v3436_v11, %s6160_s20  ;;  %6060 = vrcp.f32 %v3376_v23 }
 0x3f3   : > { %3472 = vrot.lane.b32.xlu1 %v3438_v14, %s6160_s20  ;;  %v7179_v30 = vpop.eup %6046 }
 0x3f4   : > { %v6049_v13 = vpop.eup %6048 }
 0x3f5   : > { %v7183_v62 = vpop.eup %6050  ;;  %v3377_v35 = vadd.f32 1.0, %v6049_v13 }
 0x3f6   : > { %v6053_v2 = vpop.eup %6052 }
 0x3f7   : > { %3474 = vrot.lane.b32.xlu1 %v3439_v8, %s6160_s20  ;;  %v7187_v18 = vpop.eup %6054  ;;  %6062 = vrcp.f32 %v3377_v35  ;;  %v3378_v51 = vadd.f32 1.0, %v6053_v2 }
 0x3f8   : > { %v7190_v61 = vpop.eup %6056 }
 0x3f9   : > { %v7193_v56 = vpop.eup %6058  ;;  %6064 = vrcp.f32 %v3378_v51 }
 0x3fa   : > { %v7199_v57 = vpop.eup %6060 }
 0x3fb   : > { %3476 = vrot.lane.b32.xlu1 %v3440_v31, %s6160_s20 }
 0x3ff   : > { %3478 = vrot.lane.b32.xlu1 %v3441_v59, %s6160_s20 }
 0x401   : > { %v7203_v1 = vpop.eup %6062 }
 0x403   : > { %3480 = vrot.lane.b32.xlu1 %v3442_v38, %s6160_s20  ;;  %v7207_v47 = vpop.eup %6064 }
 0x407   : > { %3482 = vrot.lane.b32.xlu1 %v3443_v44, %s6160_s20 }
 0x451   : > { %v3553_v60 = vpop.permute.xlu1 %3552 }
 0x452   : > { %v3549_v4 = vpop.permute.xlu0 %3548  ;;  %v3598_v53 = vmul.f32 %v7187_v18, %v3553_v60 }
 0x453   : > { %v3596_v34 = vmul.f32 %v7179_v30, %v3549_v4 }
 0x455   : > { %3628 = vrot.lane.b32.xlu0 %v3596_v34, %s6160_s20  ;;  %v3555_v12 = vpop.permute.xlu1 %3554 }
 0x456   : > { %v3551_v45 = vpop.permute.xlu0 %3550  ;;  %v3599_v37 = vmul.f32 %v7193_v56, %v3555_v12 }
 0x457   : > { %v3597_v52 = vmul.f32 %v7183_v62, %v3551_v45 }
 0x459   : > { %3630 = vrot.lane.b32.xlu0 %v3597_v52, %s6160_s20  ;;  %v3559_v41 = vpop.permute.xlu1 %3558 }
 0x45a   : > { %v3557_v22 = vpop.permute.xlu0 %3556  ;;  %v3601_v27 = vmul.f32 %v7203_v1, %v3559_v41 }
 0x45b   : > { %v3600_v33 = vmul.f32 %v7199_v57, %v3557_v22 }
 0x45d   : > { %3632 = vrot.lane.b32.xlu0 %v3598_v53, %s6160_s20  ;;  %v3563_v32 = vpop.permute.xlu1 %3562 }
 0x45e   : > { %v3603_v17 = vmul.f32 %v7190_v61, %v3563_v32  ;;  %v3561_v29 = vpop.permute.xlu0 %3560 }
 0x45f   : > { %v3602_v11 = vmul.f32 %v7207_v47, %v3561_v29 }
 0x460   : > { %3642 = vrot.lane.b32.xlu1 %v3603_v17, %s6160_s20 }
 0x461   : > { %3634 = vrot.lane.b32.xlu0 %v3599_v37, %s6160_s20  ;;  %v3471_v14 = vpop.permute.xlu1 %3470 }
 0x462   : > { %v3469_v59 = vpop.permute.xlu0 %3468  ;;  %v3517_v39 = vmul.f32 %v7183_v62, %v3471_v14 }
 0x463   : > { %v3516_v44 = vmul.f32 %v7179_v30, %v3469_v59 }
 0x465   : > { %3636 = vrot.lane.b32.xlu0 %v3600_v33, %s6160_s20  ;;  %v3473_v8 = vpop.permute.xlu1 %3472 }
 0x466   : > { %v3518_v16 = vmul.f32 %v7187_v18, %v3473_v8 }
 0x469   : > { %3638 = vrot.lane.b32.xlu0 %v3601_v27, %s6160_s20  ;;  %v3475_v31 = vpop.permute.xlu1 %3474 }
 0x46a   : > { %v3519_v15 = vmul.f32 %v7193_v56, %v3475_v31 }
 0x46d   : > { %3640 = vrot.lane.b32.xlu0 %v3602_v11, %s6160_s20  ;;  %v3477_v38 = vpop.permute.xlu1 %3476 }
 0x46e   : > { %v3520_v43 = vmul.f32 %v7199_v57, %v3477_v38 }
 0x471   : > { %v3479_v42 = vpop.permute.xlu1 %3478 }
 0x472   : > { %v3521_v63 = vmul.f32 %v7203_v1, %v3479_v42 }
 0x475   : > { %v3481_v20 = vpop.permute.xlu1 %3480 }
 0x476   : > { %v3522_v52 = vmul.f32 %v7207_v47, %v3481_v20  ;;  %v4965_v20 = vmul.f32 -1.442695, %v7127_v6 }
 0x479   : > { %v3483_v48 = vpop.permute.xlu1 %3482 }
 0x47a   : > { %v3523_v34 = vmul.f32 %v7190_v61, %v3483_v48 }
 0x4c7   : > { %v3629_v36 = vpop.permute.xlu0 %3628 }
 0x4c8   : > { %v7212_v54 = vadd.f32 %v3629_v36, %v3516_v44 }
 0x4ca   : > { %6066 = vtanh.f32 %v7212_v54 }
 0x4cb   : > { %v3631_v58 = vpop.permute.xlu0 %3630 }
 0x4cc   : > { %v7216_v3 = vadd.f32 %v3631_v58, %v3517_v39 }
 0x4ce   : > { %6068 = vtanh.f32 %v7216_v3 }
 0x4cf   : > { %v3633_v0 = vpop.permute.xlu0 %3632 }
 0x4d0   : > { %v7220_v25 = vadd.f32 %v3633_v0, %v3518_v16  ;;  %v3444_v16 = vld [vmem:[#allocation3 + $0x40] sm:$0xff]  ;;  %v3445_v0 = vld [vmem:[#allocation3 + $0x48] sm:$0xff] }
 0x4d2   : > { %6070 = vtanh.f32 %v7220_v25  ;;  %v3643_v4 = vpop.permute.xlu1 %3642 }
 0x4d3   : > { %v3635_v40 = vpop.permute.xlu0 %3634  ;;  %v7237_v45 = vadd.f32 %v3643_v4, %v3523_v34  ;;  %v4968_v34 = vmul.f32 -1.442695, %v7130_v46 }
 0x4d4   : > { %v6067_v21 = vpop.eup %6066  ;;  %v7224_v26 = vadd.f32 %v3635_v40, %v3519_v15  ;;  %v4966_v40 = vmul.f32 -1.442695, %v7122_v10 }
 0x4d5   : > { %3724 = vrot.lane.b32.xlu0 %v6067_v21, %s6160_s20 }
 0x4d6   : > { %6072 = vtanh.f32 %v7224_v26 }
 0x4d7   : > { %v3637_v50 = vpop.permute.xlu0 %3636 }
 0x4d8   : > { %v6069_v55 = vpop.eup %6068  ;;  %v7229_v60 = vadd.f32 %v3637_v50, %v3520_v43 }
 0x4d9   : > { %3726 = vrot.lane.b32.xlu1 %v6069_v55, %s6160_s20 }
 0x4da   : > { %6074 = vtanh.f32 %v7229_v60 }
 0x4db   : > { %v3639_v23 = vpop.permute.xlu0 %3638 }
 0x4dc   : > { %v6071_v13 = vpop.eup %6070  ;;  %v7235_v12 = vadd.f32 %v3639_v23, %v3521_v63 }
 0x4dd   : > { %3728 = vrot.lane.b32.xlu0 %v6071_v13, %s6160_s20 }
 0x4de   : > { %6076 = vtanh.f32 %v7235_v12 }
 0x4df   : > { %v3641_v35 = vpop.permute.xlu0 %3640  ;;  %6078 = vtanh.f32 %v7237_v45 }
 0x4e0   : > { %v6073_v2 = vpop.eup %6072  ;;  %v7242_v41 = vadd.f32 %v3641_v35, %v3522_v52 }
 0x4e1   : > { %3730 = vrot.lane.b32.xlu1 %v6073_v2, %s6160_s20 }
 0x4e2   : > { %6080 = vtanh.f32 %v7242_v41 }
 0x4e3   : > { %6082 = vtanh.f32 %v7122_v10 }
 0x4e4   : > { %v6075_v53 = vpop.eup %6074  ;;  %6084 = vtanh.f32 %v7127_v6  ;;  %v4967_v6 = vmul.f32 -1.442695, %v7133_v19 }
 0x4e5   : > { %3732 = vrot.lane.b32.xlu0 %v6075_v53, %s6160_s20  ;;  %6086 = vtanh.f32 %v7130_v46  ;;  %v4969_v53 = vmul.f32 -1.442695, %v7141_v49 }
 0x4e6   : > { %6088 = vtanh.f32 %v7133_v19 }
 0x4e7   : > { %6090 = vtanh.f32 %v7137_v5 }
 0x4e8   : > { %v6077_v51 = vpop.eup %6076  ;;  %6092 = vtanh.f32 %v7141_v49 }
 0x4e9   : > { %3734 = vrot.lane.b32.xlu1 %v6077_v51, %s6160_s20  ;;  %v6079_v32 = vpop.eup %6078  ;;  %6094 = vtanh.f32 %v7148_v9 }
 0x4ea   : > { %6096 = vtanh.f32 %v7152_v24 }
 0x4eb   : > { %6098 = vpow2.f32 %v4965_v20  ;;  %v4980_v20 = vld [vmem:[%s7605_s10 + $0x58] sm:$0xff] }
 0x4ec   : > { %v6081_v17 = vpop.eup %6080  ;;  %6100 = vpow2.f32 %v4966_v40  ;;  %v3449_v40 = vld [vmem:[#allocation3 + $0x68] sm:$0xff] }
 0x4ed   : > { %3738 = vrot.lane.b32.xlu1 %v6079_v32, %s6160_s20  ;;  %3736 = vrot.lane.b32.xlu0 %v6081_v17, %s6160_s20  ;;  %6102 = vpow2.f32 %v4967_v6  ;;  %v3446_v32 = vld [vmem:[#allocation3 + $0x50] sm:$0xff] }
 0x547   : > { %v3725_v37 = vpop.permute.xlu0 %3724 }
 0x548   : > { %v3772_v22 = vmul.f32 %v7179_v30, %v3725_v37 }
 0x54a   : > { %3884 = vrot.lane.b32.xlu0 %v3772_v22, %s6161_s18 }
 0x54b   : > { %v3727_v33 = vpop.permute.xlu1 %3726 }
 0x54c   : > { %v3773_v27 = vmul.f32 %v7183_v62, %v3727_v33  ;;  %v4972_v33 = vmul.f32 -1.442695, %v7148_v9 }
 0x54e   : > { %3886 = vrot.lane.b32.xlu1 %v3773_v27, %s6161_s18  ;;  %v4970_v27 = vmul.f32 -1.442695, %v7137_v5 }
 0x54f   : > { %v3729_v29 = vpop.permute.xlu0 %3728 }
 0x550   : > { %v3774_v11 = vmul.f32 %v7187_v18, %v3729_v29 }
 0x552   : > { %3888 = vrot.lane.b32.xlu0 %v3774_v11, %s6161_s18  ;;  %v3447_v11 = vld [vmem:[#allocation3 + $0x58] sm:$0xff] }
 0x553   : > { %v3731_v14 = vpop.permute.xlu1 %3730 }
 0x554   : > { %v3775_v8 = vmul.f32 %v7193_v56, %v3731_v14 }
 0x556   : > { %3890 = vrot.lane.b32.xlu1 %v3775_v8, %s6161_s18 }
 0x557   : > { %v3733_v31 = vpop.permute.xlu0 %3732 }
 0x558   : > { %v3776_v30 = vmul.f32 %v7199_v57, %v3733_v31 }
 0x55a   : > { %3892 = vrot.lane.b32.xlu0 %v3776_v30, %s6161_s18  ;;  %v4971_v30 = vmul.f32 -1.442695, %v7152_v24  ;;  %v4978_v24 = vld [vmem:[%s7605_s10 + $0x48] sm:$0xff] }
 0x55b   : > { %v3735_v62 = vpop.permute.xlu1 %3734 }
 0x55c   : > { %v3777_v59 = vmul.f32 %v7203_v1, %v3735_v62  ;;  %v6083_v1 = vpop.eup %6082  ;;  %v3981_v62 = vld [vmem:[%s7605_s10] sm:$0xff] }
 0x55d   : > { %v6085_v44 = vpop.eup %6084 }
 0x55e   : > { %3894 = vrot.lane.b32.xlu1 %v3777_v59, %s6161_s18  ;;  %v3982_v59 = vld [vmem:[%s7605_s10 + $0x8] sm:$0xff] }
 0x55f   : > { %v3739_v18 = vpop.permute.xlu1 %3738  ;;  %v3737_v56 = vpop.permute.xlu0 %3736 }
 0x560   : > { %v3779_v38 = vmul.f32 %v7190_v61, %v3739_v18  ;;  %v3778_v57 = vmul.f32 %v7207_v47, %v3737_v56  ;;  %v6087_v61 = vpop.eup %6086  ;;  %v4977_v18 = vld [vmem:[%s7605_s10 + $0x40] sm:$0xff] }
 0x561   : > { %v6089_v47 = vpop.eup %6088  ;;  %v3448_v56 = vld [vmem:[#allocation3 + $0x60] sm:$0xff] }
 0x562   : > { %3898 = vrot.lane.b32.xlu1 %v3779_v38, %s6161_s18  ;;  %3896 = vrot.lane.b32.xlu0 %v3778_v57, %s6161_s18  ;;  %v6091_v36 = vpop.eup %6090  ;;  %v7324_v38 = vpack.c.bf16 %v3982_v59, %v3981_v62  ;;  %v7329_v57 = vpack.c.bf16 %v4978_v24, %v4977_v18 }
 0x563   : > { %v6093_v39 = vpop.eup %6092 }
 0x564   : > { %v6095_v42 = vpop.eup %6094  ;;  %5755 = vmatprep.subr.bf16.mxu0 %v7324_v38  ;;  %5774 = vmatprep.subr.bf16.mxu1 %v7329_v57 }
 0x565   : > { %v6097_v58 = vpop.eup %6096  ;;  %5757 = vmatpush3.bf16.msra.mxu0 %v7324_v38  ;;  %5776 = vmatpush3.bf16.msra.mxu1 %v7329_v57 }
 0x566   : > { %3566 = vrot.lane.b32.xlu1 %v6083_v1, %s6159_s19  ;;  %3564 = vrot.lane.b32.xlu0 %v6085_v44, %s6159_s19  ;;  %v6099_v48 = vpop.eup %6098 }
 0x567   : > { %v3380_v55 = vadd.f32 1.0, %v6099_v48  ;;  %v6101_v10 = vpop.eup %6100  ;;  %v3986_v48 = vld [vmem:[%s7605_s10 + $0x28] sm:$0xff] }
 0x568   : > { %v3381_v23 = vadd.f32 1.0, %v6101_v10  ;;  %v6103_v52 = vpop.eup %6102 }
 0x569   : > { %6104 = vrcp.f32 %v3380_v55  ;;  %v3382_v51 = vadd.f32 1.0, %v6103_v52  ;;  %v4982_v55 = vld [vmem:[%s7605_s10 + $0x68] sm:$0xff]  ;;  %v4983_v52 = vld [vmem:[%s7605_s10 + $0x70] sm:$0xff] }
 0x56a   : > { %3570 = vrot.lane.b32.xlu1 %v6087_v61, %s6159_s19  ;;  %3568 = vrot.lane.b32.xlu0 %v6089_v47, %s6159_s19  ;;  %6106 = vpow2.f32 %v4968_v34 }
 0x56b   : > { %6108 = vrcp.f32 %v3381_v23 }
 0x56c   : > { %6110 = vpow2.f32 %v4969_v53 }
 0x56d   : > { %6112 = vrcp.f32 %v3382_v51 }
 0x56e   : > { %3574 = vrot.lane.b32.xlu1 %v6091_v36, %s6159_s19  ;;  %3572 = vrot.lane.b32.xlu0 %v6093_v39, %s6159_s19  ;;  %6114 = vpow2.f32 %v4972_v33  ;;  %v3983_v36 = vld [vmem:[%s7605_s10 + $0x10] sm:$0xff]  ;;  %v3984_v39 = vld [vmem:[%s7605_s10 + $0x18] sm:$0xff] }
 0x56f   : > { %6116 = vpow2.f32 %v4970_v27 }
 0x572   : > { %3578 = vrot.lane.b32.xlu1 %v6095_v42, %s6159_s19  ;;  %3576 = vrot.lane.b32.xlu0 %v6097_v58, %s6159_s19  ;;  %v4979_v42 = vld [vmem:[%s7605_s10 + $0x50] sm:$0xff] }
 0x573   : > { %v7297_v35 = vpop.eup %6104 }
 0x574   : > { %v6107_v37 = vpop.eup %6106 }
 0x575   : > { %v7303_v22 = vpop.eup %6108  ;;  %v3383_v29 = vadd.f32 1.0, %v6107_v37 }
 0x576   : > { %3484 = vrot.lane.b32.xlu1 %v3444_v16, %s6160_s20  ;;  %v6111_v8 = vpop.eup %6110 }
 0x577   : > { %6118 = vrcp.f32 %v3383_v29  ;;  %v7310_v31 = vpop.eup %6112  ;;  %v3384_v5 = vadd.f32 1.0, %v6111_v8 }
 0x578   : > { %6120 = vpow2.f32 %v4971_v30  ;;  %v6115_v1 = vpop.eup %6114 }
 0x579   : > { %6122 = vrcp.f32 %v3384_v5  ;;  %v6117_v61 = vpop.eup %6116  ;;  %v3387_v16 = vadd.f32 1.0, %v6115_v1 }
 0x57a   : > { %3486 = vrot.lane.b32.xlu1 %v3445_v0, %s6160_s20  ;;  %v7348_v0 = vpack.c.bf16 %v3984_v39, %v3983_v36 }
 0x57b   : > { %6124 = vrcp.f32 %v3387_v16 }
 0x57c   : > { %5759 = vmatprep.subr.bf16.mxu0 %v7348_v0 }
 0x57d   : > { %5761 = vmatpush3.bf16.msra.mxu0 %v7348_v0 }
 0x581   : > { %v7334_v47 = vpop.eup %6118 }
 0x5bc   : > { %v3885_v15 = vpop.permute.xlu0 %3884 }
 0x5bd   : > { %3932 = vst.msk [vmem:[#allocation2 + $0x11] sm:$0xff] %vm799_vm2, %v3885_v15  ;;  %3949 = vxpose.xlu0.b32.start [1/8] (short) (narrow) %v3885_v15, 16  ;;  %v3385_v15 = vadd.f32 1.0, %v6117_v61 }
 0x5bf   : > { %6126 = vrcp.f32 %v3385_v15 }
 0x5c0   : > { %v3887_v21 = vpop.permute.xlu1 %3886 }
 0x5c1   : > { %3933 = vst.msk [vmem:[#allocation2 + $0x21] sm:$0xff] %vm799_vm2, %v3887_v21  ;;  %3950 = vxpose.xlu0.b32.cont [2/8] (short) (narrow) %v3887_v21, 16  ;;  %v7353_v21 = vpack.c.bf16 %v4980_v20, %v4979_v42 }
 0x5c3   : > { %5778 = vmatprep.subr.bf16.mxu1 %v7353_v21 }
 0x5c4   : > { %v3889_v43 = vpop.permute.xlu0 %3888  ;;  %5780 = vmatpush3.bf16.msra.mxu1 %v7353_v21 }
 0x5c5   : > { %3934 = vst.msk [vmem:[#allocation2 + $0x31] sm:$0xff] %vm799_vm2, %v3889_v43  ;;  %3951 = vxpose.xlu0.b32.cont [3/8] (short) (narrow) %v3889_v43, 16  ;;  %v3985_v43 = vld [vmem:[%s7605_s10 + $0x20] sm:$0xff] }
 0x5c6   : > { %v7369_v6 = vpack.c.bf16 %v3986_v48, %v3985_v43 }
 0x5c8   : > { %v3891_v50 = vpop.permute.xlu1 %3890  ;;  %5763 = vmatprep.subr.bf16.mxu0 %v7369_v6 }
 0x5c9   : > { %3935 = vst.msk [vmem:[#allocation2 + $0x41] sm:$0xff] %vm799_vm2, %v3891_v50  ;;  %3952 = vxpose.xlu0.b32.cont [4/8] (short) (narrow) %v3891_v50, 16  ;;  %v4981_v50 = vld [vmem:[%s7605_s10 + $0x60] sm:$0xff]  ;;  %5765 = vmatpush3.bf16.msra.mxu0 %v7369_v6 }
 0x5ca   : > { %v7374_v10 = vpack.c.bf16 %v4982_v55, %v4981_v50 }
 0x5cc   : > { %v3893_v63 = vpop.permute.xlu0 %3892  ;;  %5782 = vmatprep.subr.bf16.mxu1 %v7374_v10 }
 0x5cd   : > { %3936 = vst.msk [vmem:[#allocation2 + $0x51] sm:$0xff] %vm799_vm2, %v3893_v63  ;;  %3953 = vxpose.xlu0.b32.cont [5/8] (short) (narrow) %v3893_v63, 16  ;;  %5784 = vmatpush3.bf16.msra.mxu1 %v7374_v10 }
 0x5d0   : > { %v3895_v4 = vpop.permute.xlu1 %3894 }
 0x5d1   : > { %3937 = vst.msk [vmem:[#allocation2 + $0x61] sm:$0xff] %vm799_vm2, %v3895_v4  ;;  %3954 = vxpose.xlu0.b32.cont [6/8] (short) (narrow) %v3895_v4, 16  ;;  %v6121_v4 = vpop.eup %6120 }
 0x5d2   : > { %v7378_v23 = vpop.eup %6122  ;;  %v3386_v51 = vadd.f32 1.0, %v6121_v4 }
 0x5d3   : > { %v7407_v33 = vpop.eup %6124 }
 0x5d4   : > { %v3899_v13 = vpop.permute.xlu1 %3898  ;;  %v3897_v19 = vpop.permute.xlu0 %3896  ;;  %6128 = vrcp.f32 %v3386_v51 }
 0x5d5   : > { %3939 = vst.msk [vmem:[#allocation2 + $0x81] sm:$0xff] %vm799_vm2, %v3899_v13  ;;  %3938 = vst.msk [vmem:[#allocation2 + $0x71] sm:$0xff] %vm799_vm2, %v3897_v19  ;;  %3955 = vxpose.xlu0.b32.cont [7/8] (short) (narrow) %v3897_v19, 16  ;;  %v3988_v19 = vld [vmem:[%s7605_s10 + $0x38] sm:$0xff]  ;;  %v7410_v27 = vpop.eup %6126 }
 0x5d8   : > { %v3565_v2 = vpop.permute.xlu0 %3564  ;;  %v3567_v17 = vpop.permute.xlu1 %3566 }
 0x5d9   : > { %v3604_v46 = vmul.f32 %v7297_v35, %v3565_v2  ;;  %3956 = vxpose.xlu0.b32.end [8/8] (short) (narrow) %v3899_v13, 16  ;;  %v3605_v49 = vmul.f32 %v7303_v22, %v3567_v17  ;;  %v3987_v13 = vld [vmem:[%s7605_s10 + $0x30] sm:$0xff] }
 0x5da   : > { %v7393_v53 = vpack.c.bf16 %v3988_v19, %v3987_v13  ;;  %v3450_v17 = vld [vmem:[#allocation3 + $0x70] sm:$0xff] }
 0x5db   : > { %3644 = vrot.lane.b32.xlu1 %v3604_v46, %s6160_s20  ;;  %v4984_v46 = vld [vmem:[%s7605_s10 + $0x78] sm:$0xff] }
 0x5dc   : > { %v3569_v14 = vpop.permute.xlu0 %3568  ;;  %v3571_v44 = vpop.permute.xlu1 %3570  ;;  %5767 = vmatprep.subr.bf16.mxu0 %v7393_v53 }
 0x5dd   : > { %v3606_v9 = vmul.f32 %v7310_v31, %v3569_v14  ;;  %v3607_v58 = vmul.f32 %v7334_v47, %v3571_v44  ;;  %5769 = vmatpush3.bf16.msra.mxu0 %v7393_v53 }
 0x5de   : > { %5770 = vmatprep.subr.bf16.mxu0 %v6155_v28  ;;  %v7417_v8 = vpop.eup %6128 }
 0x5df   : > { %3488 = vrot.lane.b32.xlu1 %v3446_v32, %s6160_s20  ;;  %v7398_v32 = vpack.c.bf16 %v4984_v46, %v4983_v52 }
 0x5e0   : > { %v3573_v63 = vpop.permute.xlu0 %3572  ;;  %v3575_v34 = vpop.permute.xlu1 %3574 }
 0x5e1   : > { %v3608_v2 = vmul.f32 %v7378_v23, %v3573_v63  ;;  %5786 = vmatprep.subr.bf16.mxu1 %v7398_v32  ;;  %v3609_v29 = vmul.f32 %v7410_v27, %v3575_v34 }
 0x5e2   : > { %5788 = vmatpush3.bf16.msra.mxu1 %v7398_v32 }
 0x5e3   : > { %3646 = vrot.lane.b32.xlu1 %v3605_v49, %s6160_s20  ;;  %5789 = vmatprep.subr.bf16.mxu1 %v6155_v28 }
 0x5e4   : > { %v3579_v37 = vpop.permute.xlu1 %3578  ;;  %v3577_v14 = vpop.permute.xlu0 %3576 }
 0x5e5   : > { %v3611_v49 = vmul.f32 %v7407_v33, %v3579_v37  ;;  %v3610_v30 = vmul.f32 %v7417_v8, %v3577_v14 }
 0x5e7   : > { %3490 = vrot.lane.b32.xlu1 %v3447_v11, %s6160_s20  ;;  %v3451_v11 = vld [vmem:[#allocation3 + $0x78] sm:$0xff] }
 0x5e8   : > { %v3485_v62 = vpop.permute.xlu1 %3484 }
 0x5e9   : > { %v3524_v18 = vmul.f32 %v7297_v35, %v3485_v62 }
 0x5eb   : > { %3648 = vrot.lane.b32.xlu1 %v3606_v9, %s6160_s20 }
 0x5ec   : > { %v3487_v59 = vpop.permute.xlu1 %3486 }
 0x5ed   : > { %v3525_v44 = vmul.f32 %v7303_v22, %v3487_v59 }
 0x5ef   : > { %3492 = vrot.lane.b32.xlu1 %v3448_v56, %s6160_s20 }
 0x5f3   : > { %3650 = vrot.lane.b32.xlu1 %v3607_v58, %s6160_s20 }
 0x5f7   : > { %3494 = vrot.lane.b32.xlu1 %v3449_v40, %s6160_s20 }
 0x5fb   : > { %3652 = vrot.lane.b32.xlu1 %v3608_v2, %s6160_s20 }
 0x5ff   : > { %3496 = vrot.lane.b32.xlu1 %v3450_v17, %s6160_s20 }
 0x602   : > { %3658 = vrot.lane.b32.xlu0 %v3611_v49, %s6160_s20 }
 0x603   : > { %3654 = vrot.lane.b32.xlu1 %v3609_v29, %s6160_s20 }
 0x607   : > { %3498 = vrot.lane.b32.xlu1 %v3451_v11, %s6160_s20 }
 0x60b   : > { %3656 = vrot.lane.b32.xlu1 %v3610_v30, %s6160_s20 }
 0x63d   : > { %v3965_v9 = vpop.trf.xlu0 }
 0x63e   : > { %5583 = vmatprep.mubr.msk.f32.mxu0 %vm3030_vm6, %v3965_v9  ;;  %5609 = vmatprep.mubr.msk.f32.mxu1 %vm3030_vm6, %v3965_v9 }
 0x641   : > { %v3966_v5 = vpop.trf.xlu0 }
 0x642   : > { %5584 = vmatmul.mubr.msk.f32.vlgmr.msra.gmra.mrb[16].mxu0 %vm3030_vm6, %v3966_v5  ;;  %5610 = vmatmul.mubr.msk.f32.vlgmr.msra.gmra.mrb[52].mxu1 %vm3030_vm6, %v3966_v5 }
 0x643   : > { %5590 = vmatprep.mubr.msk.f32.mxu0 %vm6156_vm5, %v6157_v7  ;;  %5616 = vmatprep.mubr.msk.f32.mxu1 %vm6156_vm5, %v6157_v7 }
 0x64d   : > { %v3645_v56 = vpop.permute.xlu1 %3644 }
 0x64e   : > { %v7430_v24 = vadd.f32 %v3645_v56, %v3524_v18 }
 0x650   : > { %6130 = vtanh.f32 %v7430_v24 }
 0x651   : > { %v3489_v1 = vpop.permute.xlu1 %3488 }
 0x652   : > { %v3526_v58 = vmul.f32 %v7310_v31, %v3489_v1 }
 0x655   : > { %v3647_v61 = vpop.permute.xlu1 %3646 }
 0x656   : > { %v7434_v36 = vadd.f32 %v3647_v61, %v3525_v44 }
 0x658   : > { %6132 = vtanh.f32 %v7434_v36 }
 0x659   : > { %v3491_v39 = vpop.permute.xlu1 %3490 }
 0x65a   : > { %v6131_v42 = vpop.eup %6130  ;;  %v3527_v43 = vmul.f32 %v7334_v47, %v3491_v39 }
 0x65b   : > { %3740 = vrot.lane.b32.xlu1 %v6131_v42, %s6160_s20 }
 0x65d   : > { %v3649_v16 = vpop.permute.xlu1 %3648 }
 0x65e   : > { %v7439_v20 = vadd.f32 %v3649_v16, %v3526_v58 }
 0x660   : > { %6134 = vtanh.f32 %v7439_v20 }
 0x661   : > { %v3493_v15 = vpop.permute.xlu1 %3492 }
 0x662   : > { %v6133_v40 = vpop.eup %6132  ;;  %v3528_v4 = vmul.f32 %v7378_v23, %v3493_v15 }
 0x663   : > { %3742 = vrot.lane.b32.xlu1 %v6133_v40, %s6160_s20 }
 0x665   : > { %v3651_v48 = vpop.permute.xlu1 %3650 }
 0x666   : > { %v7444_v50 = vadd.f32 %v3651_v48, %v3527_v43 }
 0x668   : > { %6136 = vtanh.f32 %v7444_v50 }
 0x669   : > { %v3495_v55 = vpop.permute.xlu1 %3494 }
 0x66a   : > { %v6135_v63 = vpop.eup %6134  ;;  %v3529_v2 = vmul.f32 %v7410_v27, %v3495_v55 }
 0x66b   : > { %3744 = vrot.lane.b32.xlu1 %v6135_v63, %s6160_s20 }
 0x66d   : > { %v3653_v34 = vpop.permute.xlu1 %3652 }
 0x66e   : > { %v7449_v13 = vadd.f32 %v3653_v34, %v3528_v4 }
 0x670   : > { %6138 = vtanh.f32 %v7449_v13 }
 0x671   : > { %v3497_v19 = vpop.permute.xlu1 %3496 }
 0x672   : > { %v6137_v52 = vpop.eup %6136  ;;  %v3530_v49 = vmul.f32 %v7417_v8, %v3497_v19 }
 0x673   : > { %3746 = vrot.lane.b32.xlu1 %v6137_v52, %s6160_s20 }
 0x674   : > { %v3659_v30 = vpop.permute.xlu0 %3658 }
 0x675   : > { %v3655_v46 = vpop.permute.xlu1 %3654 }
 0x676   : > { %v7454_v51 = vadd.f32 %v3655_v46, %v3529_v2 }
 0x678   : > { %6140 = vtanh.f32 %v7454_v51 }
 0x679   : > { %v3499_v17 = vpop.permute.xlu1 %3498 }
 0x67a   : > { %v6139_v37 = vpop.eup %6138  ;;  %v3531_v29 = vmul.f32 %v7407_v33, %v3499_v17 }
 0x67b   : > { %3748 = vrot.lane.b32.xlu1 %v6139_v37, %s6160_s20 }
 0x67c   : > { %v7462_v9 = vadd.f32 %v3659_v30, %v3531_v29 }
 0x67d   : > { %v3657_v11 = vpop.permute.xlu1 %3656 }
 0x67e   : > { %v7460_v14 = vadd.f32 %v3657_v11, %v3530_v49  ;;  %v4976_v49 = vld [vmem:[%s7607_s12] ss:$0 sm:$0xff] }
 0x680   : > { %6142 = vtanh.f32 %v7460_v14 }
 0x681   : > { %6144 = vtanh.f32 %v7462_v9 }
 0x682   : > { %v6141_v5 = vpop.eup %6140 }
 0x683   : > { %3750 = vrot.lane.b32.xlu1 %v6141_v5, %s6160_s20 }
 0x68a   : > { %v6143_v62 = vpop.eup %6142 }
 0x68b   : > { %3752 = vrot.lane.b32.xlu1 %v6143_v62, %s6160_s20  ;;  %v6145_v59 = vpop.eup %6144 }
 0x68f   : > { %3754 = vrot.lane.b32.xlu1 %v6145_v59, %s6160_s20  ;;  %s6162_s20 = smov 112  }
 0x6cd   : > { %v3741_v18 = vpop.permute.xlu1 %3740 }
 0x6ce   : > { %v3780_v56 = vmul.f32 %v7297_v35, %v3741_v18 }
 0x6d0   : > { %3900 = vrot.lane.b32.xlu1 %v3780_v56, %s6161_s18 }
 0x6d5   : > { %v3743_v1 = vpop.permute.xlu1 %3742 }
 0x6d6   : > { %v3781_v44 = vmul.f32 %v7303_v22, %v3743_v1 }
 0x6d8   : > { %3902 = vrot.lane.b32.xlu1 %v3781_v44, %s6161_s18 }
 0x6dd   : > { %v3745_v61 = vpop.permute.xlu1 %3744 }
 0x6de   : > { %v3782_v39 = vmul.f32 %v7310_v31, %v3745_v61 }
 0x6e0   : > { %3904 = vrot.lane.b32.xlu0 %v3782_v39, %s6161_s18 }
 0x6e5   : > { %v3747_v42 = vpop.permute.xlu1 %3746 }
 0x6e6   : > { %v3783_v58 = vmul.f32 %v7334_v47, %v3747_v42 }
 0x6e8   : > { %3906 = vrot.lane.b32.xlu1 %v3783_v58, %s6161_s18 }
 0x6ed   : > { %v3749_v16 = vpop.permute.xlu1 %3748 }
 0x6ee   : > { %v3784_v35 = vmul.f32 %v7378_v23, %v3749_v16 }
 0x6f0   : > { %3908 = vrot.lane.b32.xlu0 %v3784_v35, %s6161_s18 }
 0x6f5   : > { %v3751_v15 = vpop.permute.xlu1 %3750 }
 0x6f6   : > { %v3785_v22 = vmul.f32 %v7410_v27, %v3751_v15 }
 0x6f8   : > { %3910 = vrot.lane.b32.xlu1 %v3785_v22, %s6161_s18 }
 0x6fd   : > { %v3753_v40 = vpop.permute.xlu1 %3752 }
 0x6fe   : > { %v3786_v31 = vmul.f32 %v7417_v8, %v3753_v40 }
 0x700   : > { %3912 = vrot.lane.b32.xlu0 %v3786_v31, %s6161_s18 }
 0x701   : > { %v3755_v43 = vpop.permute.xlu1 %3754 }
 0x702   : > { %v3787_v47 = vmul.f32 %v7407_v33, %v3755_v43 }
 0x704   : > { %3914 = vrot.lane.b32.xlu1 %v3787_v47, %s6161_s18 }
 0x708   : > { %3804 = vrot.lane.b32.xlu1 %v7212_v54, %s6162_s20  ;;  %v7511_v54 = vld [vmem:[%s7606_s11] sm:$0xff] }
 0x70c   : > { %3806 = vrot.lane.b32.xlu1 %v7216_v3, %s6162_s20  ;;  %v7516_v3 = vld [vmem:[%s7606_s11 + $0x8] sm:$0xff] }
 0x710   : > { %3808 = vrot.lane.b32.xlu1 %v7220_v25, %s6162_s20 }
 0x714   : > { %3810 = vrot.lane.b32.xlu1 %v7224_v26, %s6162_s20 }
 0x715   : > { %v5585_v23 = vpop.f32.mrb[16].mxu0  ;;  %v5611_v27 = vpop.f32.mrb[52].mxu1 }
 0x716   : > { %v4061_v8 = vpop.f32.mrb[17].mxu0  ;;  %v4226_v48 = vpop.f32.mrb[53].mxu1 }
 0x717   : > { %v5771_v33 = vpack.c.bf16 %v5585_v23, %v4061_v8  ;;  %v5790_v55 = vpack.c.bf16 %v5611_v27, %v4226_v48 }
 0x718   : > { %3812 = vrot.lane.b32.xlu1 %v7229_v60, %s6162_s20 }
 0x719   : > { %5772 = vmatpush3.bf16.msra.mxu0 %v5771_v33  ;;  %5791 = vmatpush3.bf16.msra.mxu1 %v5790_v55 }
 0x71a   : > { %5793 = vmatprep.subr.bf16.mxu1 %v7324_v38 }
 0x71c   : > { %3814 = vrot.lane.b32.xlu1 %v7235_v12, %s6162_s20  ;;  %5591 = vmatmul.mubr.msk.f32.vlgmr.msra.gmra.mrb[18].mxu0 %vm799_vm2, %v7511_v54 }
 0x71d   : > { %5617 = vmatmul.mubr.msk.f32.vlgmr.msra.gmra.mrb[54].mxu1 %vm799_vm2, %v7516_v3 }
 0x71e   : > { %5795 = vmatpush3.bf16.msra.mxu1 %v7324_v38 }
 0x71f   : > { %5797 = vmatprep.subr.bf16.mxu1 %v7348_v0 }
 0x720   : > { %3816 = vrot.lane.b32.xlu1 %v7242_v41, %s6162_s20 }
 0x722   : > { %5799 = vmatpush3.bf16.msra.mxu1 %v7348_v0 }
 0x723   : > { %5801 = vmatprep.subr.bf16.mxu1 %v7369_v6 }
 0x724   : > { %3818 = vrot.lane.b32.xlu1 %v7237_v45, %s6162_s20 }
 0x726   : > { %5803 = vmatpush3.bf16.msra.mxu1 %v7369_v6 }
 0x727   : > { %5805 = vmatprep.subr.bf16.mxu1 %v7393_v53 }
 0x728   : > { %3820 = vrot.lane.b32.xlu1 %v7430_v24, %s6162_s20 }
 0x72a   : > { %5807 = vmatpush3.bf16.msra.mxu1 %v7393_v53 }
 0x72b   : > { %5808 = vmatprep.subr.bf16.mxu1 %v6155_v28 }
 0x72c   : > { %3822 = vrot.lane.b32.xlu1 %v7434_v36, %s6162_s20 }
 0x730   : > { %3824 = vrot.lane.b32.xlu1 %v7439_v20, %s6162_s20 }
 0x734   : > { %3826 = vrot.lane.b32.xlu1 %v7444_v50, %s6162_s20 }
 0x738   : > { %3828 = vrot.lane.b32.xlu1 %v7449_v13, %s6162_s20 }
 0x73c   : > { %3830 = vrot.lane.b32.xlu1 %v7454_v51, %s6162_s20 }
 0x740   : > { %3832 = vrot.lane.b32.xlu1 %v7460_v14, %s6162_s20 }
 0x742   : > { %v3901_v25 = vpop.permute.xlu1 %3900 }
 0x743   : > { %3940 = vst.msk [vmem:[#allocation2 + $0xb1] sm:$0xff] %vm799_vm2, %v3901_v25  ;;  %4315 = vxpose.xlu0.b32.start [1/8] (short) (narrow) %v3901_v25, 16 }
 0x74a   : > { %v3903_v26 = vpop.permute.xlu1 %3902 }
 0x74b   : > { %3941 = vst.msk [vmem:[#allocation2 + $0xc1] sm:$0xff] %vm799_vm2, %v3903_v26  ;;  %4316 = vxpose.xlu0.b32.cont [2/8] (short) (narrow) %v3903_v26, 16 }
 0x752   : > { %v3905_v60 = vpop.permute.xlu0 %3904 }
 0x753   : > { %3942 = vst.msk [vmem:[#allocation2 + $0xd1] sm:$0xff] %vm799_vm2, %v3905_v60  ;;  %4317 = vxpose.xlu0.b32.cont [3/8] (short) (narrow) %v3905_v60, 16 }
 0x75a   : > { %v3907_v12 = vpop.permute.xlu1 %3906 }
 0x75b   : > { %3943 = vst.msk [vmem:[#allocation2 + $0xe1] sm:$0xff] %vm799_vm2, %v3907_v12  ;;  %4318 = vxpose.xlu0.b32.cont [4/8] (short) (narrow) %v3907_v12, 16 }
 0x762   : > { %v3909_v45 = vpop.permute.xlu0 %3908 }
 0x763   : > { %3944 = vst.msk [vmem:[#allocation2 + $0xf1] sm:$0xff] %vm799_vm2, %v3909_v45  ;;  %4319 = vxpose.xlu0.b32.cont [5/8] (short) (narrow) %v3909_v45, 16 }
 0x76a   : > { %v3911_v41 = vpop.permute.xlu1 %3910 }
 0x76b   : > { %3945 = vst.msk [vmem:[#allocation2 + $0x101] sm:$0xff] %vm799_vm2, %v3911_v41  ;;  %4320 = vxpose.xlu0.b32.cont [6/8] (short) (narrow) %v3911_v41, 16 }
 0x772   : > { %v3913_v38 = vpop.permute.xlu0 %3912 }
 0x773   : > { %3946 = vst.msk [vmem:[#allocation2 + $0x111] sm:$0xff] %vm799_vm2, %v3913_v38  ;;  %4321 = vxpose.xlu0.b32.cont [7/8] (short) (narrow) %v3913_v38, 16 }
 0x776   : > { %v3915_v0 = vpop.permute.xlu1 %3914 }
 0x777   : > { %3947 = vst.msk [vmem:[#allocation2 + $0x121] sm:$0xff] %vm799_vm2, %v3915_v0  ;;  %4322 = vxpose.xlu0.b32.end [8/8] (short) (narrow) %v3915_v0, 16 }
 0x77a   : > { %v3805_v6 = vpop.permute.xlu1 %3804 }
 0x77b   : > { %3852 = vst.msk [vmem:[#allocation3] sm:$0xff] %vm799_vm2, %v3805_v6 }
 0x77e   : > { %v3807_v53 = vpop.permute.xlu1 %3806 }
 0x77f   : > { %3853 = vst.msk [vmem:[#allocation3 + $0x8] sm:$0xff] %vm799_vm2, %v3807_v53 }
 0x782   : > { %v3809_v24 = vpop.permute.xlu1 %3808 }
 0x783   : > { %3854 = vst.msk [vmem:[#allocation3 + $0x10] sm:$0xff] %vm799_vm2, %v3809_v24 }
 0x786   : > { %v3811_v36 = vpop.permute.xlu1 %3810 }
 0x787   : > { %3855 = vst.msk [vmem:[#allocation3 + $0x18] sm:$0xff] %vm799_vm2, %v3811_v36 }
 0x78a   : > { %v3813_v20 = vpop.permute.xlu1 %3812 }
 0x78b   : > { %3856 = vst.msk [vmem:[#allocation3 + $0x20] sm:$0xff] %vm799_vm2, %v3813_v20 }
 0x78e   : > { %v3815_v50 = vpop.permute.xlu1 %3814 }
 0x78f   : > { %3857 = vst.msk [vmem:[#allocation3 + $0x28] sm:$0xff] %vm799_vm2, %v3815_v50 }
 0x792   : > { %v3817_v63 = vpop.permute.xlu1 %3816 }
 0x793   : > { %3858 = vst.msk [vmem:[#allocation3 + $0x30] sm:$0xff] %vm799_vm2, %v3817_v63 }
 0x796   : > { %v3819_v4 = vpop.permute.xlu1 %3818 }
 0x797   : > { %3859 = vst.msk [vmem:[#allocation3 + $0x38] sm:$0xff] %vm799_vm2, %v3819_v4 }
 0x79a   : > { %v3821_v34 = vpop.permute.xlu1 %3820 }
 0x79b   : > { %3860 = vst.msk [vmem:[#allocation3 + $0x40] sm:$0xff] %vm799_vm2, %v3821_v34 }
 0x79e   : > { %v3823_v13 = vpop.permute.xlu1 %3822 }
 0x79f   : > { %3861 = vst.msk [vmem:[#allocation3 + $0x48] sm:$0xff] %vm799_vm2, %v3823_v13 }
 0x7a0   : > { %3834 = vrot.lane.b32.xlu0 %v7462_v9, %s6162_s20 }
 0x7a2   : > { %v3825_v19 = vpop.permute.xlu1 %3824 }
 0x7a3   : > { %3862 = vst.msk [vmem:[#allocation3 + $0x50] sm:$0xff] %vm799_vm2, %v3825_v19 }
 0x7a6   : > { %v3827_v52 = vpop.permute.xlu1 %3826 }
 0x7a7   : > { %3863 = vst.msk [vmem:[#allocation3 + $0x58] sm:$0xff] %vm799_vm2, %v3827_v52 }
 0x7aa   : > { %v3829_v2 = vpop.permute.xlu1 %3828 }
 0x7ab   : > { %3864 = vst.msk [vmem:[#allocation3 + $0x60] sm:$0xff] %vm799_vm2, %v3829_v2 }
 0x7ae   : > { %v3831_v46 = vpop.permute.xlu1 %3830 }
 0x7af   : > { %3865 = vst.msk [vmem:[#allocation3 + $0x68] sm:$0xff] %vm799_vm2, %v3831_v46 }
 0x7b2   : > { %v3833_v51 = vpop.permute.xlu1 %3832 }
 0x7b3   : > { %3866 = vst.msk [vmem:[#allocation3 + $0x70] sm:$0xff] %vm799_vm2, %v3833_v51 }
 0x7db   : > { %v4331_v17 = vpop.trf.xlu0 }
 0x7dc   : > { %5635 = vmatprep.mubr.msk.f32.mxu1 %vm3030_vm6, %v4331_v17 }
 0x7df   : > { %v4332_v37 = vpop.trf.xlu0 }
 0x7e0   : > { %5636 = vmatmul.mubr.msk.f32.vlgmr.msra.gmra.mrb[56].mxu1 %vm3030_vm6, %v4332_v37 }
 0x7e1   : > { %5642 = vmatprep.mubr.msk.f32.mxu1 %vm6156_vm5, %v6157_v7 }
 0x7ef   : > { %v4140_v29 = vpop.f32.mrb[18].mxu0 }
 0x7f0   : > { %v4150_v11 = vadd.f32 %v4976_v49, %v4140_v29  ;;  %v4306_v14 = vpop.f32.mrb[54].mxu1  ;;  %v5592_v30 = vpop.f32.mrb[19].mxu0 }
 0x7f1   : > { %v5618_v9 = vpop.f32.mrb[55].mxu1 }
 0x7f2   : > { %v4310_v5 = vadd.f32 %v4306_v14, %v4150_v11 }
 0x7f4   : > { %v4311_v62 = vand.u32 2147483647, %v4310_v5 }
 0x7f6   : > { %4313 = vst.msk [vmem:[%s6254_s22] sm:$0xff] %vm4312_vm9, %v4311_v62 }
 0x812   : > { %v3835_v59 = vpop.permute.xlu0 %3834 }
 0x813   : > { %3867 = vst.msk [vmem:[#allocation3 + $0x78] sm:$0xff] %vm799_vm2, %v3835_v59 }
 0x8b3   : > { %v5637_v18 = vpop.f32.mrb[56].mxu1 }
 0x8b4   : > { %v4427_v56 = vpop.f32.mrb[57].mxu1 }
 0x8b5   : > { %v5809_v1 = vpack.c.bf16 %v5637_v18, %v4427_v56 }
 0x8b7   : > { %5810 = vmatpush3.bf16.msra.mxu1 %v5809_v1 }
 0x8b8   : > { %5812 = vmatprep.subr.bf16.mxu1 %v7329_v57 }
 0x8ba   : > { %5643 = vmatmul.mubr.msk.f32.vlgmr.msra.gmra.mrb[58].mxu1 %vm799_vm2, %v7511_v54 }
 0x8bb   : > { %5814 = vmatpush3.bf16.msra.mxu1 %v7329_v57  ;;  %5661 = vmatprep.mubr.msk.f32.mxu1 %vm3030_vm6, %v4331_v17 }
 0x8bc   : > { %5816 = vmatprep.subr.bf16.mxu1 %v7353_v21 }
 0x8bf   : > { %5818 = vmatpush3.bf16.msra.mxu1 %v7353_v21 }
 0x8c0   : > { %5820 = vmatprep.subr.bf16.mxu1 %v7374_v10 }
 0x8c3   : > { %5822 = vmatpush3.bf16.msra.mxu1 %v7374_v10 }
 0x8c4   : > { %5824 = vmatprep.subr.bf16.mxu1 %v7398_v32 }
 0x8c7   : > { %5826 = vmatpush3.bf16.msra.mxu1 %v7398_v32 }
 0x8c8   : > { %5827 = vmatprep.subr.bf16.mxu1 %v6155_v28 }
 0x8ca   : > { %5662 = vmatmul.mubr.msk.f32.vlgmr.msra.gmra.mrb[60].mxu1 %vm3030_vm6, %v4332_v37 }
 0x8cb   : > { %5668 = vmatprep.mubr.msk.f32.mxu1 %vm6156_vm5, %v6157_v7 }
 0x99d   : > { %v5663_v57 = vpop.f32.mrb[60].mxu1 }
 0x99e   : > { %v4591_v44 = vpop.f32.mrb[61].mxu1 }
 0x99f   : > { %v5828_v61 = vpack.c.bf16 %v5663_v57, %v4591_v44 }
 0x9a1   : > { %5829 = vmatpush3.bf16.msra.mxu1 %v5828_v61 }
 0x9a4   : > { %5669 = vmatmul.mubr.msk.f32.vlgmr.msra.gmra.mrb[58].mxu1 %vm799_vm2, %v7516_v3 }
 0xa77   : > { %v4670_v21 = vpop.f32.mrb[58].mxu1 }
 0xa78   : > { %v5866_v10 = vadd.f32 %v4976_v49, %v4670_v21  ;;  %v5670_v39 = vpop.f32.mrb[59].mxu1 }
 0xa7a   : > { %v4675_v42 = vand.u32 2147483647, %v5866_v10 }
 0xa7c   : > { %5005 = vst.msk [vmem:[%s6254_s22 + $0x8] sm:$0xff] %vm4312_vm9, %v4675_v42 }
 0xa7d PF: > { %s23_s25 = sadd.s32 1, %s6152_s25  }
 0xa7e   : > { %p20_p5 = scmp.ge.s32.totalorder %s23_s25, 6  }
 0xa80   :  { %22 = sbr.rel (!%p20_p5) target bundleno = 1 (0x1), region = 122 }

</bundles_post_ra>
